<compile_context>
chip_gen: v7x
topology: tpu7x:2x2x1
jax: 0.10.0
libtpu: 0.0.40
codegen_flags: <defaults>
</compile_context>

<pallas_src>
import functools

import jax
import jax.numpy as jnp
from jax.experimental import pallas as pl
from jax.experimental.pallas import tpu as pltpu


def _dw_separable(x, dw, dwb, pw, pwb, masks, W, pw_bf16):
    """Depthwise 3x3 (stride 1, pad 1) + bias, then pointwise 1x1 conv + bias.

    x:     (C, H*W) conv input (channels on sublanes, flattened spatial on lanes)
    dw:    (C, 9) depthwise taps, dwb (C, 1)
    pw:    (C, C) pointwise weight in PyTorch (out_ch, in_ch) layout, pwb (C, 1)
    masks: (8, H*W) combined 0/1 validity masks, one row per off-centre tap.
    """
    C, HW = x.shape

    acc = x * dw[:, 4:5]                       # centre tap straight from registers
    m_idx = 0
    for k in range(9):
        if k == 4:
            continue
        dy, dx = divmod(k, 3)
        off = (dy - 1) * W + (dx - 1)
        # result[p] = x[(p + off) mod HW]; wrapped positions are exactly the
        # invalid (zero-padded) taps and get killed by the combined mask.
        sh = pltpu.roll(x, (-off) % HW, axis=1)
        sh = sh * masks[m_idx:m_idx + 1, :]
        acc = acc + sh * dw[:, k:k + 1]
        m_idx += 1
    acc = acc + dwb

    # Pointwise 1x1 conv: MXU for C >= 16 (bf16 inputs, f32 accumulation),
    # VPU broadcast-MACs only for tiny C.
    if C >= 16:
        cdt = jnp.bfloat16 if pw_bf16 else jnp.float32
        y = jnp.dot(pw.astype(cdt), acc.astype(cdt),
                    preferred_element_type=jnp.float32)
    else:
        y = acc[0:1, :] * pw[:, 0:1]
        for c in range(1, C):
            y = y + acc[c:c + 1, :] * pw[:, c:c + 1]
    return y + pwb


def rcab_kernel(x_ref, masks_ref, pp_ref, pw_ref, out_ref, *,
                W, Cr, relu_slope, eps, pw_bf16):
    b_tile, C, HW = x_ref.shape

    # Unpack the small parameters once per grid step (static lane slices).
    pp = pp_ref[...]
    gamma = pp[:, 0:1]
    beta = pp[:, 1:2]
    dw1 = pp[:, 2:11]
    dwb1 = pp[:, 11:12]
    pwb1 = pp[:, 12:13]
    dw2 = pp[:, 13:22]
    dwb2 = pp[:, 22:23]
    pwb2 = pp[:, 23:24]
    o = 24
    caw1 = pp[:, o:o + Cr]                       # (C, Cr)
    caw2 = pp[:, o + Cr:o + 2 * Cr]              # (C, Cr)
    cab2 = pp[:, o + 2 * Cr:o + 2 * Cr + 1]      # (C, 1)
    cab1 = pp[0:1, o + 2 * Cr + 1:o + 3 * Cr + 1]  # (1, Cr)

    masks = masks_ref[...]                       # (8, HW), hoisted for both convs
    pw1 = pw_ref[0]                              # (C, C)
    pw2 = pw_ref[1]

    for b in range(b_tile):                      # static unroll over the batch tile
        x = x_ref[b].astype(jnp.float32)         # residual shortcut (f32 math)

        # ---- LayerNorm over channels (sublane axis), per spatial position ----
        mean = jnp.mean(x, axis=0, keepdims=True)
        diff = x - mean
        var = jnp.mean(diff * diff, axis=0, keepdims=True)
        x_ln = diff * jax.lax.rsqrt(var + eps) * gamma + beta

        # ---- conv3x3 #1 (depthwise separable) + LeakyReLU ----
        t = _dw_separable(x_ln, dw1, dwb1, pw1, pwb1, masks, W, pw_bf16)
        t = jnp.where(t >= 0.0, t, relu_slope * t)

        # ---- conv3x3 #2 (depthwise separable) ----
        t = _dw_separable(t, dw2, dwb2, pw2, pwb2, masks, W, pw_bf16)

        # ---- channel attention (squeeze & excite), tiny MLP on VPU/XLU ----
        pooled = jnp.mean(t, axis=1, keepdims=True)                              # (C, 1)
        h = jnp.sum(caw1 * pooled, axis=0, keepdims=True) + cab1                 # (1, Cr)
        h = jnp.maximum(h, 0.0)
        a = jnp.sum(caw2 * h, axis=1, keepdims=True) + cab2                      # (C, 1)
        s = 1.0 / (1.0 + jnp.exp(-a))

        # ---- residual add (lane-dense store: HW is a multiple of 128) ----
        out_ref[b] = (x + t * s).astype(out_ref.dtype)


def rcab_forward(x_nchw, params, *, relu_slope=0.2, eps=1e-5,
                 b_tile=None, pw_bf16=True):
    N, C, H, W = x_nchw.shape
    HW = H * W
    Cr = params["ca_w1"].shape[1]

    # Batch tiling: fill each grid step with more work when C < 8, but keep at
    # least 2 grid steps so the "parallel" batch axis can split across v7x TCs.
    if b_tile is None:
        b_tile = 1
        if C < 8:
            for cand in (max(2, 8 // C), 4, 2):
                if cand > 1 and N % cand == 0 and N // cand >= 2:
                    b_tile = cand
                    break
    assert N % b_tile == 0, "b_tile must divide the batch size"

    x_flat = x_nchw.reshape(N, C, HW)

    # 8 combined boundary masks (one per off-centre tap), packed into one array.
    row = jnp.arange(HW, dtype=jnp.int32) // W
    col = jnp.arange(HW, dtype=jnp.int32) % W
    mlist = []
    for k in range(9):
        if k == 4:
            continue
        dy, dx = divmod(k, 3)
        sr, sc = row + (dy - 1), col + (dx - 1)
        valid = (sr >= 0) & (sr < H) & (sc >= 0) & (sc < W)
        mlist.append(valid.astype(jnp.float32))
    mask_pack = jnp.stack(mlist, axis=0)                                  # (8, HW)

    # Pack the 14 small per-channel parameters into one (C, K) array and the two
    # pointwise weights into one (2, C, C) array -> 4 input DMA streams total.
    p = params
    pp = jnp.concatenate([
        p["gamma"], p["beta"],
        p["dw1"], p["dwb1"], p["pwb1"],
        p["dw2"], p["dwb2"], p["pwb2"],
        p["ca_w1"], p["ca_w2"], p["ca_b2"],
        jnp.broadcast_to(p["ca_b1"], (C, Cr)),
    ], axis=1).astype(jnp.float32)                                        # (C, 25 + 3*Cr)
    pw_pack = jnp.stack([p["pw1"], p["pw2"]], axis=0).astype(jnp.float32)  # (2, C, C)

    kernel = functools.partial(rcab_kernel, W=W, Cr=Cr,
                               relu_slope=relu_slope, eps=eps, pw_bf16=pw_bf16)

    # Explicit VMEM budget: double-buffered in/out blocks + resident params +
    # headroom for in-kernel temporaries; capped at v7x's per-TC 64 MiB.
    itemsize = jnp.dtype(x_nchw.dtype).itemsize
    bytes_block = b_tile * C * HW * itemsize
    bytes_params = (mask_pack.size + pp.size + pw_pack.size) * 4
    vmem_est = 4 * bytes_block + 2 * bytes_params + 4 * bytes_block + (4 << 20)
    vmem_limit = int(min(max(vmem_est, 16 << 20), 64 << 20))

    def const_spec(a):
        # Full-array resident block with a constant index map (no re-DMA per step).
        return pl.BlockSpec(a.shape, lambda n, _nd=a.ndim: (0,) * _nd)

    out_flat = pl.pallas_call(
        kernel,
        out_shape=jax.ShapeDtypeStruct((N, C, HW), x_nchw.dtype),
        grid=(N // b_tile,),
        in_specs=[pl.BlockSpec((b_tile, C, HW), lambda n: (n, 0, 0)),
                  const_spec(mask_pack), const_spec(pp), const_spec(pw_pack)],
        out_specs=pl.BlockSpec((b_tile, C, HW), lambda n: (n, 0, 0)),
        compiler_params=pltpu.CompilerParams(
            dimension_semantics=("parallel",),   # independent batch tiles -> both v7x TCs
            vmem_limit_bytes=vmem_limit),
    )(x_flat, mask_pack, pp, pw_pack)
    return out_flat.reshape(N, C, H, W)


def init_params(key, C, reduction=4):
    Cr = max(C // reduction, 1)
    ks = jax.random.split(key, 12)
    f32 = jnp.float32

    def rnd(k, shape, scale=0.2):
        return (scale * jax.random.normal(k, shape)).astype(f32)

    return {
        # LayerNorm affine (per channel, stored as (C, 1) columns)
        "gamma": (1.0 + 0.1 * jax.random.normal(ks[0], (C, 1))).astype(f32),
        "beta": rnd(ks[1], (C, 1), 0.1),
        # depthwise-separable conv #1: depthwise (C, 9) taps, pointwise (out, in)
        "dw1": rnd(ks[2], (C, 9)),
        "dwb1": rnd(ks[3], (C, 1), 0.05),
        "pw1": rnd(ks[4], (C, C)),
        "pwb1": rnd(ks[5], (C, 1), 0.05),
        # depthwise-separable conv #2
        "dw2": rnd(ks[6], (C, 9)),
        "dwb2": rnd(ks[7], (C, 1), 0.05),
        "pw2": rnd(ks[8], (C, C)),
        "pwb2": rnd(ks[9], (C, 1), 0.05),
        # channel attention MLP: conv1x1 C->Cr (stored as W1^T, (C, Cr)), relu,
        # conv1x1 Cr->C (stored as W2, (C, Cr))
        "ca_w1": rnd(ks[10], (C, Cr)),
        "ca_b1": jnp.zeros((1, Cr), f32),
        "ca_w2": rnd(ks[11], (C, Cr)),
        "ca_b2": jnp.zeros((C, 1), f32),
    }


def rcab_reference(x, p, relu_slope=0.2, eps=1e-5):
    """Pure-JAX reference in NCHW matching the PyTorch module semantics."""
    N, C, H, W = x.shape
    mean = x.mean(axis=1, keepdims=True)
    var = ((x - mean) ** 2).mean(axis=1, keepdims=True)
    xl = (x - mean) / jnp.sqrt(var + eps)
    xl = xl * p["gamma"].reshape(1, C, 1, 1) + p["beta"].reshape(1, C, 1, 1)

    def dwsep(t, dw, dwb, pw, pwb):
        tp = jnp.pad(t, ((0, 0), (0, 0), (1, 1), (1, 1)))
        acc = jnp.zeros_like(t)
        for k in range(9):
            dy, dx = divmod(k, 3)
            acc = acc + tp[:, :, dy:dy + H, dx:dx + W] * dw[:, k].reshape(1, C, 1, 1)
        acc = acc + dwb.reshape(1, C, 1, 1)
        y = jnp.einsum("nchw,dc->ndhw", acc, pw,
                       precision=jax.lax.Precision.HIGHEST)
        return y + pwb.reshape(1, C, 1, 1)

    t = dwsep(xl, p["dw1"], p["dwb1"], p["pw1"], p["pwb1"])
    t = jnp.where(t >= 0.0, t, relu_slope * t)
    t = dwsep(t, p["dw2"], p["dwb2"], p["pw2"], p["pwb2"])

    pooled = t.mean(axis=(2, 3))                                           # (N, C)
    h = jnp.maximum(pooled @ p["ca_w1"] + p["ca_b1"].reshape(1, -1), 0.0)  # (N, Cr)
    a = h @ p["ca_w2"].T + p["ca_b2"].reshape(1, -1)                       # (N, C)
    s = jax.nn.sigmoid(a)
    return x + t * s[:, :, None, None]


if __name__ == "__main__":
    key = jax.random.PRNGKey(0)
    kx, kp, kx2, kp2 = jax.random.split(key, 4)

    # ---- Primary check (spec shapes): exercises the VPU pointwise fallback ----
    N, C, H, W = 2, 4, 16, 16
    x = jax.random.normal(kx, (N, C, H, W), jnp.float32)   # PyTorch NCHW input
    params = init_params(kp, C, reduction=4)

    out = jax.block_until_ready(rcab_forward(x, params))
    ref = rcab_reference(x, params)
    if not bool(jnp.allclose(out, ref, atol=1e-4, rtol=1e-4)):
        err = float(jnp.max(jnp.abs(out - ref)))
        raise AssertionError(f"C=4 Pallas kernel mismatch vs reference, max abs err = {err}")

    # ---- Secondary check: exercises the C>=16 MXU pointwise path (bf16 in, f32 acc) ----
    C2 = 16
    x2 = jax.random.normal(kx2, (N, C2, H, W), jnp.float32)
    params2 = init_params(kp2, C2, reduction=4)

    out2 = jax.block_until_ready(rcab_forward(x2, params2))
    ref2 = rcab_reference(x2, params2)
    if not bool(jnp.allclose(out2, ref2, atol=5e-2, rtol=5e-2)):
        err2 = float(jnp.max(jnp.abs(out2 - ref2)))
        raise AssertionError(f"C=16 (bf16 MXU pointwise) mismatch, max abs err = {err2}")

    print("KERNEL_OK")
</pallas_src>

<mosaic_0001>
module attributes {stable_mosaic.version = 11 : i64} {
  func.func @rcab_kernel(%arg0: i32, %arg1: memref<1x4x256xf32, #tpu.memory_space<vmem>>, %arg2: memref<8x256xf32, #tpu.memory_space<vmem>>, %arg3: memref<4x28xf32, #tpu.memory_space<vmem>>, %arg4: memref<2x4x4xf32, #tpu.memory_space<vmem>>, %arg5: memref<1x4x256xf32, #tpu.memory_space<vmem>>) attributes {dimension_semantics = [#tpu.dimension_semantics<parallel>], iteration_bounds = array<i64: 2>, scalar_prefetch = 0 : i64, scratch_operands = 0 : i64, tpu.core_type = #tpu.core_type<tc>, window_params = [{transform_indices = @transform_0, window_bounds = array<i64: 1, 4, 256>}, {pipeline_mode = #tpu.pipeline_mode<synchronous>, transform_indices = @transform_1, window_bounds = array<i64: 8, 256>}, {pipeline_mode = #tpu.pipeline_mode<synchronous>, transform_indices = @transform_2, window_bounds = array<i64: 4, 28>}, {pipeline_mode = #tpu.pipeline_mode<synchronous>, transform_indices = @transform_3, window_bounds = array<i64: 2, 4, 4>}, {transform_indices = @transform_4, window_bounds = array<i64: 1, 4, 256>}]} {
    %c0 = arith.constant 0 : index
    %c0_0 = arith.constant 0 : index
    %0 = vector.load %arg3[%c0, %c0_0] : memref<4x28xf32, #tpu.memory_space<vmem>>, vector<4x28xf32>
    %1 = vector.extract_strided_slice %0 {offsets = [0, 0], sizes = [4, 1], strides = [1, 1]} : vector<4x28xf32> to vector<4x1xf32>
    %2 = vector.extract_strided_slice %0 {offsets = [0, 1], sizes = [4, 1], strides = [1, 1]} : vector<4x28xf32> to vector<4x1xf32>
    %3 = vector.extract_strided_slice %0 {offsets = [0, 2], sizes = [4, 9], strides = [1, 1]} : vector<4x28xf32> to vector<4x9xf32>
    %4 = vector.extract_strided_slice %0 {offsets = [0, 11], sizes = [4, 1], strides = [1, 1]} : vector<4x28xf32> to vector<4x1xf32>
    %5 = vector.extract_strided_slice %0 {offsets = [0, 12], sizes = [4, 1], strides = [1, 1]} : vector<4x28xf32> to vector<4x1xf32>
    %6 = vector.extract_strided_slice %0 {offsets = [0, 13], sizes = [4, 9], strides = [1, 1]} : vector<4x28xf32> to vector<4x9xf32>
    %7 = vector.extract_strided_slice %0 {offsets = [0, 22], sizes = [4, 1], strides = [1, 1]} : vector<4x28xf32> to vector<4x1xf32>
    %8 = vector.extract_strided_slice %0 {offsets = [0, 23], sizes = [4, 1], strides = [1, 1]} : vector<4x28xf32> to vector<4x1xf32>
    %9 = vector.extract_strided_slice %0 {offsets = [0, 24], sizes = [4, 1], strides = [1, 1]} : vector<4x28xf32> to vector<4x1xf32>
    %10 = vector.extract_strided_slice %0 {offsets = [0, 25], sizes = [4, 1], strides = [1, 1]} : vector<4x28xf32> to vector<4x1xf32>
    %11 = vector.extract_strided_slice %0 {offsets = [0, 26], sizes = [4, 1], strides = [1, 1]} : vector<4x28xf32> to vector<4x1xf32>
    %12 = vector.extract_strided_slice %0 {offsets = [0, 27], sizes = [1, 1], strides = [1, 1]} : vector<4x28xf32> to vector<1x1xf32>
    %c0_1 = arith.constant 0 : index
    %c0_2 = arith.constant 0 : index
    %13 = vector.load %arg2[%c0_1, %c0_2] : memref<8x256xf32, #tpu.memory_space<vmem>>, vector<8x256xf32>
    %c0_3 = arith.constant 0 : index
    %c0_4 = arith.constant 0 : index
    %c0_5 = arith.constant 0 : index
    %14 = vector.load %arg4[%c0_3, %c0_4, %c0_5] : memref<2x4x4xf32, #tpu.memory_space<vmem>>, vector<1x4x4xf32>
    %15 = vector.shape_cast %14 : vector<1x4x4xf32> to vector<4x4xf32>
    %c1 = arith.constant 1 : index
    %c0_6 = arith.constant 0 : index
    %c0_7 = arith.constant 0 : index
    %16 = vector.load %arg4[%c1, %c0_6, %c0_7] : memref<2x4x4xf32, #tpu.memory_space<vmem>>, vector<1x4x4xf32>
    %17 = vector.shape_cast %16 : vector<1x4x4xf32> to vector<4x4xf32>
    %c0_8 = arith.constant 0 : index
    %c0_9 = arith.constant 0 : index
    %c0_10 = arith.constant 0 : index
    %18 = vector.load %arg1[%c0_8, %c0_9, %c0_10] : memref<1x4x256xf32, #tpu.memory_space<vmem>>, vector<1x4x256xf32>
    %19 = vector.shape_cast %18 : vector<1x4x256xf32> to vector<4x256xf32>
    %cst = arith.constant dense<0.000000e+00> : vector<256xf32>
    %20 = vector.multi_reduction <add>, %19, %cst [0] : vector<4x256xf32> to vector<256xf32>
    %21 = vector.shape_cast %20 : vector<256xf32> to vector<1x256xf32>
    %cst_11 = arith.constant 4.000000e+00 : f32
    %22 = vector.broadcast %cst_11 : f32 to vector<1x256xf32>
    %23 = arith.divf %21, %22 : vector<1x256xf32>
    %24 = vector.broadcast %23 : vector<1x256xf32> to vector<4x256xf32>
    %25 = arith.subf %19, %24 : vector<4x256xf32>
    %26 = arith.mulf %25, %25 : vector<4x256xf32>
    %cst_12 = arith.constant dense<0.000000e+00> : vector<256xf32>
    %27 = vector.multi_reduction <add>, %26, %cst_12 [0] : vector<4x256xf32> to vector<256xf32>
    %28 = vector.shape_cast %27 : vector<256xf32> to vector<1x256xf32>
    %cst_13 = arith.constant 4.000000e+00 : f32
    %29 = vector.broadcast %cst_13 : f32 to vector<1x256xf32>
    %30 = arith.divf %28, %29 : vector<1x256xf32>
    %cst_14 = arith.constant 9.99999974E-6 : f32
    %31 = vector.broadcast %cst_14 : f32 to vector<1x256xf32>
    %32 = arith.addf %30, %31 : vector<1x256xf32>
    %33 = math.rsqrt %32 : vector<1x256xf32>
    %34 = vector.broadcast %33 : vector<1x256xf32> to vector<4x256xf32>
    %35 = arith.mulf %25, %34 : vector<4x256xf32>
    %36 = vector.broadcast %1 : vector<4x1xf32> to vector<4x256xf32>
    %37 = arith.mulf %35, %36 : vector<4x256xf32>
    %38 = vector.broadcast %2 : vector<4x1xf32> to vector<4x256xf32>
    %39 = arith.addf %37, %38 : vector<4x256xf32>
    %40 = vector.extract_strided_slice %3 {offsets = [0, 4], sizes = [4, 1], strides = [1, 1]} : vector<4x9xf32> to vector<4x1xf32>
    %41 = vector.broadcast %40 : vector<4x1xf32> to vector<4x256xf32>
    %42 = arith.mulf %39, %41 : vector<4x256xf32>
    %c17_i32 = arith.constant 17 : i32
    %43 = tpu.dynamic_rotate %39 by %c17_i32 dim 1 : vector<4x256xf32>, i32 -> vector<4x256xf32>
    %44 = vector.extract_strided_slice %13 {offsets = [0, 0], sizes = [1, 256], strides = [1, 1]} : vector<8x256xf32> to vector<1x256xf32>
    %45 = vector.broadcast %44 : vector<1x256xf32> to vector<4x256xf32>
    %46 = arith.mulf %43, %45 : vector<4x256xf32>
    %47 = vector.extract_strided_slice %3 {offsets = [0, 0], sizes = [4, 1], strides = [1, 1]} : vector<4x9xf32> to vector<4x1xf32>
    %48 = vector.broadcast %47 : vector<4x1xf32> to vector<4x256xf32>
    %49 = arith.mulf %46, %48 : vector<4x256xf32>
    %50 = arith.addf %42, %49 : vector<4x256xf32>
    %c16_i32 = arith.constant 16 : i32
    %51 = tpu.dynamic_rotate %39 by %c16_i32 dim 1 : vector<4x256xf32>, i32 -> vector<4x256xf32>
    %52 = vector.extract_strided_slice %13 {offsets = [1, 0], sizes = [1, 256], strides = [1, 1]} : vector<8x256xf32> to vector<1x256xf32>
    %53 = vector.broadcast %52 : vector<1x256xf32> to vector<4x256xf32>
    %54 = arith.mulf %51, %53 : vector<4x256xf32>
    %55 = vector.extract_strided_slice %3 {offsets = [0, 1], sizes = [4, 1], strides = [1, 1]} : vector<4x9xf32> to vector<4x1xf32>
    %56 = vector.broadcast %55 : vector<4x1xf32> to vector<4x256xf32>
    %57 = arith.mulf %54, %56 : vector<4x256xf32>
    %58 = arith.addf %50, %57 : vector<4x256xf32>
    %c15_i32 = arith.constant 15 : i32
    %59 = tpu.dynamic_rotate %39 by %c15_i32 dim 1 : vector<4x256xf32>, i32 -> vector<4x256xf32>
    %60 = vector.extract_strided_slice %13 {offsets = [2, 0], sizes = [1, 256], strides = [1, 1]} : vector<8x256xf32> to vector<1x256xf32>
    %61 = vector.broadcast %60 : vector<1x256xf32> to vector<4x256xf32>
    %62 = arith.mulf %59, %61 : vector<4x256xf32>
    %63 = vector.extract_strided_slice %3 {offsets = [0, 2], sizes = [4, 1], strides = [1, 1]} : vector<4x9xf32> to vector<4x1xf32>
    %64 = vector.broadcast %63 : vector<4x1xf32> to vector<4x256xf32>
    %65 = arith.mulf %62, %64 : vector<4x256xf32>
    %66 = arith.addf %58, %65 : vector<4x256xf32>
    %c1_i32 = arith.constant 1 : i32
    %67 = tpu.dynamic_rotate %39 by %c1_i32 dim 1 : vector<4x256xf32>, i32 -> vector<4x256xf32>
    %68 = vector.extract_strided_slice %13 {offsets = [3, 0], sizes = [1, 256], strides = [1, 1]} : vector<8x256xf32> to vector<1x256xf32>
    %69 = vector.broadcast %68 : vector<1x256xf32> to vector<4x256xf32>
    %70 = arith.mulf %67, %69 : vector<4x256xf32>
    %71 = vector.extract_strided_slice %3 {offsets = [0, 3], sizes = [4, 1], strides = [1, 1]} : vector<4x9xf32> to vector<4x1xf32>
    %72 = vector.broadcast %71 : vector<4x1xf32> to vector<4x256xf32>
    %73 = arith.mulf %70, %72 : vector<4x256xf32>
    %74 = arith.addf %66, %73 : vector<4x256xf32>
    %c255_i32 = arith.constant 255 : i32
    %75 = tpu.dynamic_rotate %39 by %c255_i32 dim 1 : vector<4x256xf32>, i32 -> vector<4x256xf32>
    %76 = vector.extract_strided_slice %13 {offsets = [4, 0], sizes = [1, 256], strides = [1, 1]} : vector<8x256xf32> to vector<1x256xf32>
    %77 = vector.broadcast %76 : vector<1x256xf32> to vector<4x256xf32>
    %78 = arith.mulf %75, %77 : vector<4x256xf32>
    %79 = vector.extract_strided_slice %3 {offsets = [0, 5], sizes = [4, 1], strides = [1, 1]} : vector<4x9xf32> to vector<4x1xf32>
    %80 = vector.broadcast %79 : vector<4x1xf32> to vector<4x256xf32>
    %81 = arith.mulf %78, %80 : vector<4x256xf32>
    %82 = arith.addf %74, %81 : vector<4x256xf32>
    %c241_i32 = arith.constant 241 : i32
    %83 = tpu.dynamic_rotate %39 by %c241_i32 dim 1 : vector<4x256xf32>, i32 -> vector<4x256xf32>
    %84 = vector.extract_strided_slice %13 {offsets = [5, 0], sizes = [1, 256], strides = [1, 1]} : vector<8x256xf32> to vector<1x256xf32>
    %85 = vector.broadcast %84 : vector<1x256xf32> to vector<4x256xf32>
    %86 = arith.mulf %83, %85 : vector<4x256xf32>
    %87 = vector.extract_strided_slice %3 {offsets = [0, 6], sizes = [4, 1], strides = [1, 1]} : vector<4x9xf32> to vector<4x1xf32>
    %88 = vector.broadcast %87 : vector<4x1xf32> to vector<4x256xf32>
    %89 = arith.mulf %86, %88 : vector<4x256xf32>
    %90 = arith.addf %82, %89 : vector<4x256xf32>
    %c240_i32 = arith.constant 240 : i32
    %91 = tpu.dynamic_rotate %39 by %c240_i32 dim 1 : vector<4x256xf32>, i32 -> vector<4x256xf32>
    %92 = vector.extract_strided_slice %13 {offsets = [6, 0], sizes = [1, 256], strides = [1, 1]} : vector<8x256xf32> to vector<1x256xf32>
    %93 = vector.broadcast %92 : vector<1x256xf32> to vector<4x256xf32>
    %94 = arith.mulf %91, %93 : vector<4x256xf32>
    %95 = vector.extract_strided_slice %3 {offsets = [0, 7], sizes = [4, 1], strides = [1, 1]} : vector<4x9xf32> to vector<4x1xf32>
    %96 = vector.broadcast %95 : vector<4x1xf32> to vector<4x256xf32>
    %97 = arith.mulf %94, %96 : vector<4x256xf32>
    %98 = arith.addf %90, %97 : vector<4x256xf32>
    %c239_i32 = arith.constant 239 : i32
    %99 = tpu.dynamic_rotate %39 by %c239_i32 dim 1 : vector<4x256xf32>, i32 -> vector<4x256xf32>
    %100 = vector.extract_strided_slice %13 {offsets = [7, 0], sizes = [1, 256], strides = [1, 1]} : vector<8x256xf32> to vector<1x256xf32>
    %101 = vector.broadcast %100 : vector<1x256xf32> to vector<4x256xf32>
    %102 = arith.mulf %99, %101 : vector<4x256xf32>
    %103 = vector.extract_strided_slice %3 {offsets = [0, 8], sizes = [4, 1], strides = [1, 1]} : vector<4x9xf32> to vector<4x1xf32>
    %104 = vector.broadcast %103 : vector<4x1xf32> to vector<4x256xf32>
    %105 = arith.mulf %102, %104 : vector<4x256xf32>
    %106 = arith.addf %98, %105 : vector<4x256xf32>
    %107 = vector.broadcast %4 : vector<4x1xf32> to vector<4x256xf32>
    %108 = arith.addf %106, %107 : vector<4x256xf32>
    %109 = vector.extract_strided_slice %108 {offsets = [0, 0], sizes = [1, 256], strides = [1, 1]} : vector<4x256xf32> to vector<1x256xf32>
    %110 = vector.extract_strided_slice %15 {offsets = [0, 0], sizes = [4, 1], strides = [1, 1]} : vector<4x4xf32> to vector<4x1xf32>
    %111 = vector.broadcast %109 : vector<1x256xf32> to vector<4x256xf32>
    %112 = vector.broadcast %110 : vector<4x1xf32> to vector<4x256xf32>
    %113 = arith.mulf %111, %112 : vector<4x256xf32>
    %114 = vector.extract_strided_slice %108 {offsets = [1, 0], sizes = [1, 256], strides = [1, 1]} : vector<4x256xf32> to vector<1x256xf32>
    %115 = vector.extract_strided_slice %15 {offsets = [0, 1], sizes = [4, 1], strides = [1, 1]} : vector<4x4xf32> to vector<4x1xf32>
    %116 = vector.broadcast %114 : vector<1x256xf32> to vector<4x256xf32>
    %117 = vector.broadcast %115 : vector<4x1xf32> to vector<4x256xf32>
    %118 = arith.mulf %116, %117 : vector<4x256xf32>
    %119 = arith.addf %113, %118 : vector<4x256xf32>
    %120 = vector.extract_strided_slice %108 {offsets = [2, 0], sizes = [1, 256], strides = [1, 1]} : vector<4x256xf32> to vector<1x256xf32>
    %121 = vector.extract_strided_slice %15 {offsets = [0, 2], sizes = [4, 1], strides = [1, 1]} : vector<4x4xf32> to vector<4x1xf32>
    %122 = vector.broadcast %120 : vector<1x256xf32> to vector<4x256xf32>
    %123 = vector.broadcast %121 : vector<4x1xf32> to vector<4x256xf32>
    %124 = arith.mulf %122, %123 : vector<4x256xf32>
    %125 = arith.addf %119, %124 : vector<4x256xf32>
    %126 = vector.extract_strided_slice %108 {offsets = [3, 0], sizes = [1, 256], strides = [1, 1]} : vector<4x256xf32> to vector<1x256xf32>
    %127 = vector.extract_strided_slice %15 {offsets = [0, 3], sizes = [4, 1], strides = [1, 1]} : vector<4x4xf32> to vector<4x1xf32>
    %128 = vector.broadcast %126 : vector<1x256xf32> to vector<4x256xf32>
    %129 = vector.broadcast %127 : vector<4x1xf32> to vector<4x256xf32>
    %130 = arith.mulf %128, %129 : vector<4x256xf32>
    %131 = arith.addf %125, %130 : vector<4x256xf32>
    %132 = vector.broadcast %5 : vector<4x1xf32> to vector<4x256xf32>
    %133 = arith.addf %131, %132 : vector<4x256xf32>
    %cst_15 = arith.constant 0.000000e+00 : f32
    %134 = vector.broadcast %cst_15 : f32 to vector<4x256xf32>
    %135 = arith.cmpf oge, %133, %134 : vector<4x256xf32>
    %cst_16 = arith.constant 2.000000e-01 : f32
    %136 = vector.broadcast %cst_16 : f32 to vector<4x256xf32>
    %137 = arith.mulf %136, %133 : vector<4x256xf32>
    %138 = arith.select %135, %133, %137 : vector<4x256xi1>, vector<4x256xf32>
    %139 = vector.extract_strided_slice %6 {offsets = [0, 4], sizes = [4, 1], strides = [1, 1]} : vector<4x9xf32> to vector<4x1xf32>
    %140 = vector.broadcast %139 : vector<4x1xf32> to vector<4x256xf32>
    %141 = arith.mulf %138, %140 : vector<4x256xf32>
    %c17_i32_17 = arith.constant 17 : i32
    %142 = tpu.dynamic_rotate %138 by %c17_i32_17 dim 1 : vector<4x256xf32>, i32 -> vector<4x256xf32>
    %143 = vector.extract_strided_slice %13 {offsets = [0, 0], sizes = [1, 256], strides = [1, 1]} : vector<8x256xf32> to vector<1x256xf32>
    %144 = vector.broadcast %143 : vector<1x256xf32> to vector<4x256xf32>
    %145 = arith.mulf %142, %144 : vector<4x256xf32>
    %146 = vector.extract_strided_slice %6 {offsets = [0, 0], sizes = [4, 1], strides = [1, 1]} : vector<4x9xf32> to vector<4x1xf32>
    %147 = vector.broadcast %146 : vector<4x1xf32> to vector<4x256xf32>
    %148 = arith.mulf %145, %147 : vector<4x256xf32>
    %149 = arith.addf %141, %148 : vector<4x256xf32>
    %c16_i32_18 = arith.constant 16 : i32
    %150 = tpu.dynamic_rotate %138 by %c16_i32_18 dim 1 : vector<4x256xf32>, i32 -> vector<4x256xf32>
    %151 = vector.extract_strided_slice %13 {offsets = [1, 0], sizes = [1, 256], strides = [1, 1]} : vector<8x256xf32> to vector<1x256xf32>
    %152 = vector.broadcast %151 : vector<1x256xf32> to vector<4x256xf32>
    %153 = arith.mulf %150, %152 : vector<4x256xf32>
    %154 = vector.extract_strided_slice %6 {offsets = [0, 1], sizes = [4, 1], strides = [1, 1]} : vector<4x9xf32> to vector<4x1xf32>
    %155 = vector.broadcast %154 : vector<4x1xf32> to vector<4x256xf32>
    %156 = arith.mulf %153, %155 : vector<4x256xf32>
    %157 = arith.addf %149, %156 : vector<4x256xf32>
    %c15_i32_19 = arith.constant 15 : i32
    %158 = tpu.dynamic_rotate %138 by %c15_i32_19 dim 1 : vector<4x256xf32>, i32 -> vector<4x256xf32>
    %159 = vector.extract_strided_slice %13 {offsets = [2, 0], sizes = [1, 256], strides = [1, 1]} : vector<8x256xf32> to vector<1x256xf32>
    %160 = vector.broadcast %159 : vector<1x256xf32> to vector<4x256xf32>
    %161 = arith.mulf %158, %160 : vector<4x256xf32>
    %162 = vector.extract_strided_slice %6 {offsets = [0, 2], sizes = [4, 1], strides = [1, 1]} : vector<4x9xf32> to vector<4x1xf32>
    %163 = vector.broadcast %162 : vector<4x1xf32> to vector<4x256xf32>
    %164 = arith.mulf %161, %163 : vector<4x256xf32>
    %165 = arith.addf %157, %164 : vector<4x256xf32>
    %c1_i32_20 = arith.constant 1 : i32
    %166 = tpu.dynamic_rotate %138 by %c1_i32_20 dim 1 : vector<4x256xf32>, i32 -> vector<4x256xf32>
    %167 = vector.extract_strided_slice %13 {offsets = [3, 0], sizes = [1, 256], strides = [1, 1]} : vector<8x256xf32> to vector<1x256xf32>
    %168 = vector.broadcast %167 : vector<1x256xf32> to vector<4x256xf32>
    %169 = arith.mulf %166, %168 : vector<4x256xf32>
    %170 = vector.extract_strided_slice %6 {offsets = [0, 3], sizes = [4, 1], strides = [1, 1]} : vector<4x9xf32> to vector<4x1xf32>
    %171 = vector.broadcast %170 : vector<4x1xf32> to vector<4x256xf32>
    %172 = arith.mulf %169, %171 : vector<4x256xf32>
    %173 = arith.addf %165, %172 : vector<4x256xf32>
    %c255_i32_21 = arith.constant 255 : i32
    %174 = tpu.dynamic_rotate %138 by %c255_i32_21 dim 1 : vector<4x256xf32>, i32 -> vector<4x256xf32>
    %175 = vector.extract_strided_slice %13 {offsets = [4, 0], sizes = [1, 256], strides = [1, 1]} : vector<8x256xf32> to vector<1x256xf32>
    %176 = vector.broadcast %175 : vector<1x256xf32> to vector<4x256xf32>
    %177 = arith.mulf %174, %176 : vector<4x256xf32>
    %178 = vector.extract_strided_slice %6 {offsets = [0, 5], sizes = [4, 1], strides = [1, 1]} : vector<4x9xf32> to vector<4x1xf32>
    %179 = vector.broadcast %178 : vector<4x1xf32> to vector<4x256xf32>
    %180 = arith.mulf %177, %179 : vector<4x256xf32>
    %181 = arith.addf %173, %180 : vector<4x256xf32>
    %c241_i32_22 = arith.constant 241 : i32
    %182 = tpu.dynamic_rotate %138 by %c241_i32_22 dim 1 : vector<4x256xf32>, i32 -> vector<4x256xf32>
    %183 = vector.extract_strided_slice %13 {offsets = [5, 0], sizes = [1, 256], strides = [1, 1]} : vector<8x256xf32> to vector<1x256xf32>
    %184 = vector.broadcast %183 : vector<1x256xf32> to vector<4x256xf32>
    %185 = arith.mulf %182, %184 : vector<4x256xf32>
    %186 = vector.extract_strided_slice %6 {offsets = [0, 6], sizes = [4, 1], strides = [1, 1]} : vector<4x9xf32> to vector<4x1xf32>
    %187 = vector.broadcast %186 : vector<4x1xf32> to vector<4x256xf32>
    %188 = arith.mulf %185, %187 : vector<4x256xf32>
    %189 = arith.addf %181, %188 : vector<4x256xf32>
    %c240_i32_23 = arith.constant 240 : i32
    %190 = tpu.dynamic_rotate %138 by %c240_i32_23 dim 1 : vector<4x256xf32>, i32 -> vector<4x256xf32>
    %191 = vector.extract_strided_slice %13 {offsets = [6, 0], sizes = [1, 256], strides = [1, 1]} : vector<8x256xf32> to vector<1x256xf32>
    %192 = vector.broadcast %191 : vector<1x256xf32> to vector<4x256xf32>
    %193 = arith.mulf %190, %192 : vector<4x256xf32>
    %194 = vector.extract_strided_slice %6 {offsets = [0, 7], sizes = [4, 1], strides = [1, 1]} : vector<4x9xf32> to vector<4x1xf32>
    %195 = vector.broadcast %194 : vector<4x1xf32> to vector<4x256xf32>
    %196 = arith.mulf %193, %195 : vector<4x256xf32>
    %197 = arith.addf %189, %196 : vector<4x256xf32>
    %c239_i32_24 = arith.constant 239 : i32
    %198 = tpu.dynamic_rotate %138 by %c239_i32_24 dim 1 : vector<4x256xf32>, i32 -> vector<4x256xf32>
    %199 = vector.extract_strided_slice %13 {offsets = [7, 0], sizes = [1, 256], strides = [1, 1]} : vector<8x256xf32> to vector<1x256xf32>
    %200 = vector.broadcast %199 : vector<1x256xf32> to vector<4x256xf32>
    %201 = arith.mulf %198, %200 : vector<4x256xf32>
    %202 = vector.extract_strided_slice %6 {offsets = [0, 8], sizes = [4, 1], strides = [1, 1]} : vector<4x9xf32> to vector<4x1xf32>
    %203 = vector.broadcast %202 : vector<4x1xf32> to vector<4x256xf32>
    %204 = arith.mulf %201, %203 : vector<4x256xf32>
    %205 = arith.addf %197, %204 : vector<4x256xf32>
    %206 = vector.broadcast %7 : vector<4x1xf32> to vector<4x256xf32>
    %207 = arith.addf %205, %206 : vector<4x256xf32>
    %208 = vector.extract_strided_slice %207 {offsets = [0, 0], sizes = [1, 256], strides = [1, 1]} : vector<4x256xf32> to vector<1x256xf32>
    %209 = vector.extract_strided_slice %17 {offsets = [0, 0], sizes = [4, 1], strides = [1, 1]} : vector<4x4xf32> to vector<4x1xf32>
    %210 = vector.broadcast %208 : vector<1x256xf32> to vector<4x256xf32>
    %211 = vector.broadcast %209 : vector<4x1xf32> to vector<4x256xf32>
    %212 = arith.mulf %210, %211 : vector<4x256xf32>
    %213 = vector.extract_strided_slice %207 {offsets = [1, 0], sizes = [1, 256], strides = [1, 1]} : vector<4x256xf32> to vector<1x256xf32>
    %214 = vector.extract_strided_slice %17 {offsets = [0, 1], sizes = [4, 1], strides = [1, 1]} : vector<4x4xf32> to vector<4x1xf32>
    %215 = vector.broadcast %213 : vector<1x256xf32> to vector<4x256xf32>
    %216 = vector.broadcast %214 : vector<4x1xf32> to vector<4x256xf32>
    %217 = arith.mulf %215, %216 : vector<4x256xf32>
    %218 = arith.addf %212, %217 : vector<4x256xf32>
    %219 = vector.extract_strided_slice %207 {offsets = [2, 0], sizes = [1, 256], strides = [1, 1]} : vector<4x256xf32> to vector<1x256xf32>
    %220 = vector.extract_strided_slice %17 {offsets = [0, 2], sizes = [4, 1], strides = [1, 1]} : vector<4x4xf32> to vector<4x1xf32>
    %221 = vector.broadcast %219 : vector<1x256xf32> to vector<4x256xf32>
    %222 = vector.broadcast %220 : vector<4x1xf32> to vector<4x256xf32>
    %223 = arith.mulf %221, %222 : vector<4x256xf32>
    %224 = arith.addf %218, %223 : vector<4x256xf32>
    %225 = vector.extract_strided_slice %207 {offsets = [3, 0], sizes = [1, 256], strides = [1, 1]} : vector<4x256xf32> to vector<1x256xf32>
    %226 = vector.extract_strided_slice %17 {offsets = [0, 3], sizes = [4, 1], strides = [1, 1]} : vector<4x4xf32> to vector<4x1xf32>
    %227 = vector.broadcast %225 : vector<1x256xf32> to vector<4x256xf32>
    %228 = vector.broadcast %226 : vector<4x1xf32> to vector<4x256xf32>
    %229 = arith.mulf %227, %228 : vector<4x256xf32>
    %230 = arith.addf %224, %229 : vector<4x256xf32>
    %231 = vector.broadcast %8 : vector<4x1xf32> to vector<4x256xf32>
    %232 = arith.addf %230, %231 : vector<4x256xf32>
    %cst_25 = arith.constant dense<0.000000e+00> : vector<4xf32>
    %233 = vector.multi_reduction <add>, %232, %cst_25 [1] : vector<4x256xf32> to vector<4xf32>
    %234 = vector.shape_cast %233 : vector<4xf32> to vector<4x1xf32>
    %cst_26 = arith.constant 2.560000e+02 : f32
    %235 = vector.broadcast %cst_26 : f32 to vector<4x1xf32>
    %236 = arith.divf %234, %235 : vector<4x1xf32>
    %237 = arith.mulf %9, %236 : vector<4x1xf32>
    %cst_27 = arith.constant dense<0.000000e+00> : vector<1xf32>
    %238 = vector.multi_reduction <add>, %237, %cst_27 [0] : vector<4x1xf32> to vector<1xf32>
    %239 = vector.shape_cast %238 : vector<1xf32> to vector<1x1xf32>
    %240 = arith.addf %239, %12 : vector<1x1xf32>
    %cst_28 = arith.constant 0.000000e+00 : f32
    %241 = vector.broadcast %cst_28 : f32 to vector<1x1xf32>
    %242 = arith.maximumf %240, %241 : vector<1x1xf32>
    %243 = vector.broadcast %242 : vector<1x1xf32> to vector<4x1xf32>
    %244 = arith.mulf %10, %243 : vector<4x1xf32>
    %cst_29 = arith.constant dense<0.000000e+00> : vector<4xf32>
    %245 = vector.multi_reduction <add>, %244, %cst_29 [1] : vector<4x1xf32> to vector<4xf32>
    %246 = vector.shape_cast %245 : vector<4xf32> to vector<4x1xf32>
    %247 = arith.addf %246, %11 : vector<4x1xf32>
    %cst_30 = arith.constant 0.000000e+00 : f32
    %248 = vector.broadcast %cst_30 : f32 to vector<4x1xf32>
    %249 = arith.subf %248, %247 : vector<4x1xf32>
    %250 = math.exp %249 : vector<4x1xf32>
    %cst_31 = arith.constant 1.000000e+00 : f32
    %251 = vector.broadcast %cst_31 : f32 to vector<4x1xf32>
    %252 = arith.addf %251, %250 : vector<4x1xf32>
    %cst_32 = arith.constant 1.000000e+00 : f32
    %253 = vector.broadcast %cst_32 : f32 to vector<4x1xf32>
    %254 = arith.divf %253, %252 : vector<4x1xf32>
    %255 = vector.broadcast %254 : vector<4x1xf32> to vector<4x256xf32>
    %256 = arith.mulf %232, %255 : vector<4x256xf32>
    %257 = arith.addf %19, %256 : vector<4x256xf32>
    %c0_33 = arith.constant 0 : index
    %c0_34 = arith.constant 0 : index
    %c0_35 = arith.constant 0 : index
    %258 = vector.load %arg5[%c0_33, %c0_34, %c0_35] : memref<1x4x256xf32, #tpu.memory_space<vmem>>, vector<1x4x256xf32>
    %259 = vector.shape_cast %258 : vector<1x4x256xf32> to vector<4x256xf32>
    %260 = vector.shape_cast %257 : vector<4x256xf32> to vector<1x4x256xf32>
    tpu.vector_store %arg5[%c0_33, %c0_34, %c0_35], %260 {strides = array<i32>} : memref<1x4x256xf32, #tpu.memory_space<vmem>>, vector<1x4x256xf32>,
    return
  }
  func.func @transform_0(%arg0: i32) -> (i32, i32, i32) {
    %c0_i32 = arith.constant 0 : i32
    %c0_i32_0 = arith.constant 0 : i32
    %c0_i32_1 = arith.constant 0 : i32
    return %arg0, %c0_i32, %c0_i32_0 : i32, i32, i32
  }
  func.func @transform_1(%arg0: i32) -> (i32, i32) {
    %c0_i32 = arith.constant 0 : i32
    %c0_i32_0 = arith.constant 0 : i32
    %c0_i32_1 = arith.constant 0 : i32
    return %c0_i32, %c0_i32_0 : i32, i32
  }
  func.func @transform_2(%arg0: i32) -> (i32, i32) {
    %c0_i32 = arith.constant 0 : i32
    %c0_i32_0 = arith.constant 0 : i32
    %c0_i32_1 = arith.constant 0 : i32
    return %c0_i32, %c0_i32_0 : i32, i32
  }
  func.func @transform_3(%arg0: i32) -> (i32, i32, i32) {
    %c0_i32 = arith.constant 0 : i32
    %c0_i32_0 = arith.constant 0 : i32
    %c0_i32_1 = arith.constant 0 : i32
    %c0_i32_2 = arith.constant 0 : i32
    return %c0_i32, %c0_i32_0, %c0_i32_1 : i32, i32, i32
  }
  func.func @transform_4(%arg0: i32) -> (i32, i32, i32) {
    %c0_i32 = arith.constant 0 : i32
    %c0_i32_0 = arith.constant 0 : i32
    %c0_i32_1 = arith.constant 0 : i32
    return %arg0, %c0_i32, %c0_i32_0 : i32, i32, i32
  }
}

</mosaic_0001>

<bundles_post_ra>
// kernel: tpu_custom_call.1
= control target key start
LH: loop header
LB: loop body
LE: loop exit
PB: predicated region body
PF: predicated region fallthrough
CT: control target
= control target key end

     0   :  { %9 = vsyncpa [#allocation3], 0  ;;  %s2081_s0 = inlined_call_operand.hbm [shape: f32[2,4,256], index: 0, kind: input, shape index: {}]   ;;  %s2082_s1 = inlined_call_operand.hbm [shape: f32[8,256], index: 1, kind: input, shape index: {}]   ;;  %s2083_s2 = inlined_call_operand.hbm [shape: f32[4,28], index: 2, kind: input, shape index: {}]   ;;  %s2084_s3 = inlined_call_operand.vmem [shape: f32[2,4,4], index: 3, kind: input, shape index: {}]   ;;  %s2085_s4 = inlined_call_operand.hbm [shape: f32[2,4,256], index: 4, kind: output, shape index: {}]  }
   0x1   :  { %11 = vsyncpa [#allocation3 + $0x1], 0 }
   0x2   :  { %12 = vsyncpa [#allocation6], 0 }
   0x3   :  { %13 = vsyncpa [#allocation4], 0 }
   0x4   :  { %15 = vsyncpa [#allocation4 + $0x1], 0  ;;  %s1450_s15 = smov 0   ;;  %s1452_s16 = smov 0  }
   0x5   :  { %s1454_s17 = smov 0   ;;  %s1456_s18 = smov 0  }
   0x6 LB: > { %s1471_s19 = sadd.s32 4294967295, %s1384_s18   ;;  %s1062_s20 = sadd.s32 4294967294, %s1384_s18   ;;  %s1384_s18 = sphi %s1456_s18, %s2105_s18   ;;  %s1380_s17 = sphi %s1454_s17, %s2104_s17   ;;  %s1376_s16 = sphi %s1452_s16, %s2103_s16   ;;  %s1372_s15 = sphi %s1450_s15, %s2102_s15  }
   0x7   : > { %p41_p0 = scmp.ne.s32.totalorder %s1376_s16, %s1372_s15  ;;  %p2086_p1 = scmp.eq.s32.totalorder %s1471_s19, 0 }
   0x8   : > { %p134_p3 = scmp.eq.s32.totalorder %s1062_s20, 1  ;;  %p1063_p5 = scmp.ge.s32.totalorder %s1384_s18, 1 }
   0x9   : > { %p1480_p4 = por %p2086_p1, %p41_p0  ;;  %p141_p7 = scmp.lt.s32.totalorder %s1384_s18, 3 }
   0xa   : > { %p1485_p6 = por %p134_p3, %p41_p0  ;;  %s1386_s24 = smov [#allocation5]  }
   0xb   : > { %s2089_s21 = scalar_select %p1480_p4, 1, 0 }
   0xc   : > { %s2090_s22 = scalar_select %p1485_p6, 1, 0 }
   0xd   : > { %p1490_p8 = pnand %p1063_p5, %p141_p7  ;;  %s154_s25 = sshll.u32 %s1386_s24, 4  ;;  %s155_s25 = int_to_ptr.vmem [resolvable:$true] %s154_s25 }
   0xe   : > { %s1387_s26 = smov [#allocation7]   ;;  %s1506_s29 = sadd.s32 1, %s1384_s18  }
   0xf   : > { %s2091_s23 = scalar_select %p1490_p8, 1, 0 }
  0x10   : > { %p1095_p10 = pneg %p1490_p8  ;;  %s165_s27 = sshll.u32 %s1387_s26, 4  ;;  %s1503_s27 = int_to_ptr.vmem [resolvable:$true] %s165_s27 }
  0x11   : > { %s25_s30 = ssub.s32 %s1384_s18, %s1506_s29  ;;  %s1228_s7 = scalar_lea.hbm %s2082_s1, 256 }
  0x12   : > { %p1499_p11 = pnand %p1095_p10, %p2086_p1  ;;  %p1229_p12 = scmp.ne.s32.totalorder %s2082_s1, %s1228_s7 }
  0x13   : > { %p1235_p5 = scmp.lt.u32.totalorder %s1228_s7, %s2082_s1 }
  0x14   : > { %p1230_p13 = pneg %p1499_p11 }
  0x16   : > { %p1231_p0 = pnand %p1230_p13, %p1229_p12 }
  0x18   : > { %p1232_p3 = pneg %p1231_p0 }
  0x1a   : > { %p1237_p7 = pnand %p1235_p5, %p1232_p3 }
  0x1c   : > { %1240 = shalt.err (!%p1237_p7)
}
  0x1d   : > { %s1241_s12 = scalar_lea.vmem %s155_s25, 256  ;;  %p1249_p2 = scmp.lt.s32.totalorder %s155_s25, %s155_s25 }
  0x1e   : > { %p1242_p10 = scmp.ne.s32.totalorder %s155_s25, %s1241_s12  ;;  %p1250_p6 = scmp.lt.s32.totalorder %s1241_s12, %s1241_s12 }
  0x20   : > { %p1244_p9 = pnand %p1242_p10, %p1230_p13  ;;  %p1251_p4 = por %p1250_p6, %p1249_p2 }
  0x22   : > { %p1245_p1 = pneg %p1244_p9 }
  0x24   : > { %p1252_p8 = pnand %p1251_p4, %p1245_p1 }
  0x26   : > { %1255 = shalt.err (!%p1252_p8)
}
  0x27   : > { %1098 = dma.hbm_to_vmem [thread:$0]  (!%p1499_p11), %s2082_s1, 256, %s155_s25, [#allocation6]  }
  0x28   : > { %s1256_s26 = scalar_lea.hbm %s2083_s2, 64 }
  0x29   : > { %p1257_p9 = scmp.ne.s32.totalorder %s2083_s2, %s1256_s26  ;;  %p1263_p4 = scmp.lt.u32.totalorder %s1256_s26, %s2083_s2 }
  0x2b   : > { %p1259_p2 = pnand %p1257_p9, %p1230_p13 }
  0x2d   : > { %p1260_p1 = pneg %p1259_p2 }
  0x2f   : > { %p1265_p6 = pnand %p1263_p4, %p1260_p1 }
  0x31   : > { %1268 = shalt.err (!%p1265_p6)
}
  0x32   : > { %s1269_s25 = scalar_lea.vmem %s1503_s27, 64  ;;  %p1277_p3 = scmp.lt.s32.totalorder %s1503_s27, %s1503_s27 }
  0x33   : > { %p1270_p8 = scmp.ne.s32.totalorder %s1503_s27, %s1269_s25  ;;  %p1278_p5 = scmp.lt.s32.totalorder %s1269_s25, %s1269_s25 }
  0x35   : > { %p1272_p12 = pnand %p1270_p8, %p1230_p13  ;;  %p1279_p7 = por %p1278_p5, %p1277_p3 }
  0x37   : > { %p1273_p0 = pneg %p1272_p12 }
  0x39   : > { %p1280_p10 = pnand %p1279_p7, %p1273_p0 }
  0x3b   : > { %1283 = shalt.err (!%p1280_p10)
}
  0x3c   : > { %1101 = dma.hbm_to_vmem [thread:$0]  (!%p1499_p11), %s2083_s2, 64, %s1503_s27, [#allocation6]  }
  0x3d   : > { %p26_p13 = scmp.eq.s32.totalorder %s25_s30, 0  ;;  %s28_s11 = sadd.s32 1, %s1380_s17 }
  0x3e   : > { %p35_p9 = scmp.ne.s32.totalorder %s1380_s17, %s1376_s16  ;;  %p36_p2 = scmp.eq.s32.totalorder %s1384_s18, 0 }
  0x3f   : > { %s1565_s28 = scalar_select %p26_p13, %s1380_s17, %s28_s11  }
  0x40   : > { %p37_p1 = por %p36_p2, %p35_p9  ;;  %p2093_p4 = scmp.eq.s32.totalorder %s1471_s19, 1 }
  0x41   : > { %p1112_p8 = scmp.lt.s32.totalorder %s1384_s18, 2  ;;  %s179_s13 = sand.u32 1, %s1380_s17  }
  0x42   : > { %p1569_p6 = por %p2093_p4, %p35_p9  ;;  %s1067_s14 = sshll.u32 %s179_s13, 3 }
  0x43   : > { %s1081_s20 = sshll.u32 %s1384_s18, 7  ;;  %s183_s30 = scalar_lea.vmem [#allocation2], %s1067_s14 }
  0x44   : > { %s1579_s27 = scalar_lea.hbm %s2081_s0, %s1081_s20  ;;  %s191_s5 = sshll.u32 %s183_s30, 4  ;;  %s1581_s5 = int_to_ptr.vmem [resolvable:$true] %s191_s5 }
  0x45   : > { %p1583_p11 = pnand %p1112_p8, %p37_p1  ;;  %s180_s7 = scalar_lea.sflag [#allocation3], %s179_s13 }
  0x46   : > { %s1284_s8 = scalar_lea.hbm %s1579_s27, 128  ;;  %s1289_s10 = scalar_lea.hbm %s2081_s0, 256 }
  0x47   : > { %p1285_p12 = scmp.ne.s32.totalorder %s1579_s27, %s1284_s8  ;;  %p1286_p0 = pneg %p1583_p11 }
  0x48   : > { %p1290_p7 = scmp.lt.u32.totalorder %s1579_s27, %s2081_s0  ;;  %p1291_p10 = scmp.lt.u32.totalorder %s1289_s10, %s1284_s8 }
  0x49   : > { %p1287_p3 = pnand %p1286_p0, %p1285_p12  ;;  %p1293_p9 = scmp.lt.u32.totalorder %s1284_s8, %s1579_s27 }
  0x4a   : > { %p1292_p13 = por %p1291_p10, %p1290_p7 }
  0x4b   : > { %p1288_p5 = pneg %p1287_p3 }
  0x4c   : > { %p1294_p2 = por %p1293_p9, %p1292_p13 }
  0x4e   : > { %p1295_p1 = pnand %p1294_p2, %p1288_p5 }
  0x50   : > { %1298 = shalt.err (!%p1295_p1)
}
  0x51   : > { %s1299_s13 = scalar_lea.vmem %s1581_s5, 128  ;;  %s1388_s20 = smov [#allocation2]  }
  0x52   : > { %p1300_p4 = scmp.ne.s32.totalorder %s1581_s5, %s1299_s13  ;;  %s1304_s24 = sshll.u32 %s1388_s20, 4  ;;  %s1305_s24 = int_to_ptr.vmem [resolvable:$false] %s1304_s24 }
  0x53   : > { %s1306_s26 = scalar_lea.vmem %s1305_s24, 256  ;;  %p1307_p3 = scmp.lt.s32.totalorder %s1581_s5, %s1305_s24 }
  0x54   : > { %p1302_p8 = pnand %p1300_p4, %p1286_p0  ;;  %p1308_p7 = scmp.lt.s32.totalorder %s1306_s26, %s1299_s13 }
  0x56   : > { %p1303_p12 = pneg %p1302_p8  ;;  %p1309_p10 = por %p1308_p7, %p1307_p3 }
  0x58   : > { %p1310_p13 = pnand %p1309_p10, %p1303_p12 }
  0x5a   : > { %1313 = shalt.err (!%p1310_p13)
}
  0x5b   : > { %1105 = dma.hbm_to_vmem [thread:$0]  (!%p1583_p11), %s1579_s27, 128, %s1581_s5, %s180_s7  }
  0x5c   : > { %p2096_p5 = scmp.ne.s32.totalorder %s2091_s23, 0 }
  0x5d   : > { %s1615_s30 = sand.u32 (!%p2096_p5), 1, %s1376_s16   ;;  %p2097_p0 = scmp.ne.s32.totalorder (!%p2096_p5), %s2089_s21, 0 }
  0x5e   : > { %200 = sbr.rel (%p2096_p5) target bundleno = 1118 (0x45e), region = 36  ;;  %s1071_s8 = sshll.u32 (!%p2096_p5), %s1615_s30, 3 }
  0x5f   : > { %s203_s25 = scalar_lea.sflag (!%p2096_p5), [#allocation3], %s1615_s30  ;;  %s1621_s9 = scalar_lea.vmem (!%p2096_p5), [#allocation2], %s1071_s8 }
  0x65   : > { %1359 = dma.done.wait (%p2097_p0), %s203_s25, 128  }
  0x66   : > { %1361 = vsyncadd (%p2097_p0), %s203_s25, 4294967168  ;;  %p2098_p11 = scmp.eq.s32.totalorder %s1471_s19, 0 }
  0x68   : > { %1363 = dma.done.wait (%p2098_p11), [#allocation6], 320   ;;  %p2099_p9 = pmov %p2098_p11 }
  0x69   : > { %v1389_v0 = vmov 0   ;;  %v1390_v1 = vmov 6   ;;  %v1632_v2 = vld [vmem:[#allocation7] sm:$0xf]  ;;  %v1391_v3 = vmov 1   ;;  %v1392_v4 = vmov 2  }
  0x6a   : > { %1365 = vsyncadd (%p2099_p9), [#allocation6], 4294966976  ;;  %1185 = vset.pattern.permute.xlu0 %v1389_v0  ;;  %1187 = vset.pattern.permute.xlu1 %v1390_v1  ;;  %v1393_v5 = vmov 4   ;;  %v1394_v6 = vmov 3   ;;  %v1395_v7 = vmov 5   ;;  %v1396_v8 = vmov 7  }
  0x6b   : > { %303 = vperm.xlu0 %1185, %v1632_v2   ;;  %327 = vperm.xlu1 %1187, %v1632_v2   ;;  %v1647_v9 = vld [vmem:[%s1621_s9] sm:$0xff]  ;;  %v1397_v10 = vmov 8   ;;  %vm249_vm0 = vcmask 1043456   ;;  %v1398_v12 = vmov 9   ;;  %v1399_v17 = vmov 10   ;;  %s1401_s21 = smov 16  }
  0x6c   : > { %v247_v11 = vcombine.high %v1647_v9, %v1647_v9  ;;  %v250_v13 = vsel %vm249_vm0, %v1647_v9, 0.0  ;;  %v1400_v52 = vmov 839922192   ;;  %v308_v54 = vlaneseq  ;;  %s1402_s23 = smov 17   ;;  %s1403_s27 = smov 15  }
  0x6d   : > { %v251_v15 = vrot.slane %v250_v13, 4  ;;  %v306_v53 = vunpack.c.l.s4 %v1400_v52  ;;  %s1404_s5 = smov 1   ;;  %s1405_s6 = smov 111   ;;  %vm912_vm11 = vcmask 199872  }
  0x6e   : > { %v257_v14 = vsel %vm249_vm0, %v247_v11, 0.0  ;;  %v1660_v57 = vshrl.u32 %v308_v54, 7  ;;  %s1407_s7 = smov 127   ;;  %v242_v11 = vld [vmem:[%s2084_s3] sm:$0xf]  ;;  %s1408_s14 = smov 113  }
  0x6f   : > { %1186 = vset.pattern.permute.xlu0 %v1391_v3  ;;  %1188 = vset.pattern.permute.xlu1 %v1392_v4  ;;  %v258_v16 = vrot.slane %v257_v14, 4  ;;  %v252_v18 = vadd.f32 %v251_v15, %v250_v13  ;;  %v307_v56 = vunpack.c.0.s8 %v306_v53  ;;  %s1409_s13 = smov 112   ;;  %v1412_v15 = vmov 16   ;;  %s1422_s26 = smov 125  }
  0x70   : > { %315 = vperm.xlu0 %1186, %v1632_v2   ;;  %361 = vperm.xlu1 %1188, %v1632_v2   ;;  %s1082_s25 = sshll.u32 %s1471_s19, 7  ;;  %s238_s9 = scalar_lea.vmem [#allocation8], %s1071_s8 }
  0x71   : > { %v259_v19 = vadd.f32 %v258_v16, %v257_v14  ;;  %v253_v20 = vrot.slane %v252_v18, 2  ;;  %v1663_v60 = vsub.s32 %v307_v56, %v1660_v57  ;;  %v1411_v14 = vmov 15   ;;  %s1424_s19 = smov [#allocation8]  }
  0x72   : > { %v1413_v16 = vmov 18   ;;  %s1318_s8 = sshll.u32 %s1424_s19, 4  ;;  %s1319_s8 = int_to_ptr.vmem [resolvable:$false] %s1318_s8 }
  0x73   : > { %v260_v21 = vrot.slane %v259_v19, 2  ;;  %v254_v22 = vadd.f32 %v253_v20, %v252_v18  ;;  %v1415_v18 = vmov 20   ;;  %v1417_v20 = vmov 13   ;;  %s1320_s10 = scalar_lea.vmem %s1319_s8, 256 }
  0x74   : > { %1190 = vset.pattern.permute.xlu0 %v1393_v5  ;;  %1189 = vset.pattern.permute.xlu1 %v1394_v6 }
  0x75   : > { %417 = vperm.xlu0 %1190, %v1632_v2   ;;  %389 = vperm.xlu1 %1189, %v1632_v2   ;;  %v261_v23 = vadd.f32 %v260_v21, %v259_v19  ;;  %v255_v24 = vrot.slane %v254_v22, 1  ;;  %v1416_v19 = vmov 12   ;;  %v1418_v21 = vmov 21  }
  0x77   : > { %v262_v25 = vrot.slane %v261_v23, 1  ;;  %v256_v26 = vadd.f32 %v255_v24, %v254_v22  ;;  %v1419_v22 = vmov 14  }
  0x79   : > { %1191 = vset.pattern.permute.xlu0 %v1395_v7  ;;  %1197 = vset.pattern.permute.xlu1 %v1389_v0  ;;  %v263_v27 = vadd.f32 %v262_v25, %v261_v23  ;;  %v265_v28 = vmul.f32 0.25, %v256_v26 }
  0x7a   : > { %445 = vperm.xlu0 %1191, %v1632_v2  }
  0x7b   : > { %v266_v29 = vmul.f32 0.25, %v263_v27 }
  0x7d   : > { %v269_v30 = vcombine.low %v265_v28, %v266_v29 }
  0x7e   : > { %1192 = vset.pattern.permute.xlu0 %v1396_v8 }
  0x7f   : > { %473 = vperm.xlu0 %1192, %v1632_v2   ;;  %v271_v31 = vsub.f32 %v1647_v9, %v269_v30 }
  0x81   : > { %v272_v32 = vmul.f32 %v271_v31, %v271_v31 }
  0x83   : > { %1193 = vset.pattern.permute.xlu0 %v1397_v10  ;;  %v274_v33 = vcombine.high %v272_v32, %v272_v32  ;;  %v276_v34 = vsel %vm249_vm0, %v272_v32, 0.0  ;;  %v1406_v10 = vmov 11  }
  0x84   : > { %501 = vperm.xlu0 %1193, %v1632_v2   ;;  %v277_v36 = vrot.slane %v276_v34, 4 }
  0x85   : > { %v283_v35 = vsel %vm249_vm0, %v274_v33, 0.0 }
  0x86   : > { %v284_v37 = vrot.slane %v283_v35, 4  ;;  %v278_v38 = vadd.f32 %v277_v36, %v276_v34  ;;  %v1732_v36 = vand.u32 127, %v308_v54  ;;  %v1773_v54 = vsub.s32 3, %v1660_v57 }
  0x88   : > { %1194 = vset.pattern.permute.xlu0 %v1398_v12  ;;  %v285_v39 = vadd.f32 %v284_v37, %v283_v35  ;;  %v279_v40 = vrot.slane %v278_v38, 2  ;;  %v1410_v12 = vmov 17   ;;  %v1735_v37 = vsub.s32 0, %v1660_v57 }
  0x89   : > { %529 = vperm.xlu0 %1194, %v1632_v2   ;;  %vm347_vm1 = vcmp.lt.s32.totalorder %v1732_v36, 17  ;;  %vm375_vm2 = vcmp.lt.s32.totalorder %v1732_v36, 16  ;;  %vm403_vm3 = vcmp.lt.s32.totalorder %v1732_v36, 15  ;;  %vm431_vm4 = vcmp.lt.s32.totalorder %v1732_v36, 1 }
  0x8a   : > { %v286_v41 = vrot.slane %v285_v39, 2  ;;  %v280_v42 = vadd.f32 %v279_v40, %v278_v38  ;;  %v1737_v38 = vld [vmem:[#allocation5] sm:$0xff]  ;;  %vm459_vm5 = vcmp.lt.s32.totalorder %v1732_v36, 127  ;;  %vm487_vm6 = vcmp.lt.s32.totalorder %v1732_v36, 113 }
  0x8b   : > { %vm515_vm7 = vcmp.lt.s32.totalorder %v1732_v36, 112  ;;  %vm543_vm8 = vcmp.lt.s32.totalorder %v1732_v36, 111 }
  0x8c   : > { %v287_v43 = vadd.f32 %v286_v41, %v285_v39  ;;  %v281_v44 = vrot.slane %v280_v42, 1  ;;  %v1739_v39 = vld [vmem:[#allocation5 + $0x8] sm:$0xff] }
  0x8d   : > { %1195 = vset.pattern.permute.xlu0 %v1399_v17  ;;  %v1414_v17 = vmov 19  }
  0x8e   : > { %v288_v45 = vrot.slane %v287_v43, 1  ;;  %v282_v46 = vadd.f32 %v281_v44, %v280_v42  ;;  %v1744_v42 = vrot.slane %v1737_v38, %v1735_v37 }
  0x90   : > { %v289_v47 = vadd.f32 %v288_v45, %v287_v43  ;;  %v290_v48 = vmul.f32 0.25, %v282_v46  ;;  %v1748_v43 = vrot.slane %v1739_v39, %v1735_v37  ;;  %v1755_v46 = vsub.s32 1, %v1660_v57 }
  0x92   : > { %v291_v49 = vmul.f32 0.25, %v289_v47  ;;  %v292_v50 = vadd.f32 1e-05, %v290_v48  ;;  %v1758_v48 = vsub.s32 2, %v1660_v57  ;;  %v1770_v52 = vrot.slane %v1739_v39, %v1755_v46 }
  0x94   : > { %v293_v51 = vadd.f32 1e-05, %v291_v49  ;;  %1220 = vrsqrt.f32 %v292_v50 }
  0x96   : > { %1222 = vrsqrt.f32 %v293_v51  ;;  %v1766_v51 = vrot.slane %v1737_v38, %v1755_v46 }
  0x9e   : > { %v1221_v55 = vpop.eup %1220 }
  0xa0   : > { %v1223_v58 = vpop.eup %1222 }
  0xa1   : > { %v298_v59 = vcombine.low %v1221_v55, %v1223_v58  ;;  %v1781_v58 = vrot.slane %v1737_v38, %v1758_v48 }
  0xa3   : > { %v300_v62 = vmul.f32 %v298_v59, %v271_v31  ;;  %v1785_v59 = vrot.slane %v1739_v39, %v1758_v48 }
  0xea   : > { %v304_v61 = vpop.permute.xlu0 %303  ;;  %v1713_v23 = vpop.permute.xlu1 %327 }
  0xeb   : > { %v311_v63 = vrot.slane %v304_v61, %v1663_v60 }
  0xed   : > { %v313_v5 = vmul.f32 %v311_v63, %v300_v62  ;;  %v1793_v63 = vsub.s32 4, %v1660_v57 }
  0xef   : > { %v316_v1 = vpop.permute.xlu0 %315  ;;  %v362_v24 = vpop.permute.xlu1 %361 }
  0xf0   : > { %v323_v7 = vrot.slane %v316_v1, %v1663_v60 }
  0xf2   : > { %v1667_v8 = vadd.f32 %v323_v7, %v313_v5 }
  0xf4   : > { %371 = vrot.lane.b32.xlu1 %v1667_v8, %s1401_s21  ;;  %341 = vrot.lane.b32.xlu0 %v1667_v8, %s1402_s23  ;;  %v339_v13 = vcombine.high %v1667_v8, %v1667_v8  ;;  %v390_v25 = vpop.permute.xlu1 %389  ;;  %v1715_v26 = vpop.permute.xlu0 %417 }
  0xf8   : > { %399 = vrot.lane.b32.xlu1 %v1667_v8, %s1403_s27  ;;  %557 = vperm.xlu0 %1195, %v1632_v2  }
  0xf9   : > { %v1717_v28 = vpop.permute.xlu0 %445 }
  0xfc   : > { %427 = vrot.lane.b32.xlu1 %v1667_v8, %s1404_s5  ;;  %539 = vrot.lane.b32.xlu0 %v1667_v8, %s1405_s6 }
  0xfd   : > { %1196 = vset.pattern.permute.xlu0 %v1406_v10 }
  0xfe   : > { %v1719_v31 = vpop.permute.xlu0 %473 }
 0x100   : > { %455 = vrot.lane.b32.xlu1 %v1667_v8, %s1407_s7  ;;  %568 = vperm.xlu0 %1196, %v1632_v2  }
 0x103   : > { %v1723_v33 = vpop.permute.xlu0 %501 }
 0x104   : > { %483 = vrot.lane.b32.xlu1 %v1667_v8, %s1408_s14  ;;  %1199 = vset.pattern.permute.xlu0 %v1392_v4 }
 0x105   : > { %650 = vperm.xlu0 %1199, %v242_v11  }
 0x108   : > { %511 = vrot.lane.b32.xlu1 %v1667_v8, %s1409_s13  ;;  %v1729_v35 = vpop.permute.xlu0 %529 }
 0x109   : > { %1202 = vset.pattern.permute.xlu0 %v1410_v12  ;;  %v1803_v12 = vrot.slane %v1739_v39, %v1773_v54 }
 0x10a   : > { %696 = vperm.xlu0 %1202, %v1632_v2  }
 0x10c   : > { %343 = vrot.lane.b32.xlu1 %v339_v13, %s1402_s23 }
 0x10e   : > { %1205 = vset.pattern.permute.xlu0 %v1411_v14 }
 0x10f   : > { %742 = vperm.xlu0 %1205, %v1632_v2  }
 0x110   : > { %373 = vrot.lane.b32.xlu1 %v339_v13, %s1401_s21 }
 0x113   : > { %1206 = vset.pattern.permute.xlu0 %v1412_v15 }
 0x114   : > { %401 = vrot.lane.b32.xlu1 %v339_v13, %s1403_s27  ;;  %758 = vperm.xlu0 %1206, %v1632_v2  }
 0x118   : > { %429 = vrot.lane.b32.xlu1 %v339_v13, %s1404_s5  ;;  %1207 = vset.pattern.permute.xlu0 %v1413_v16 }
 0x119   : > { %774 = vperm.xlu0 %1207, %v1632_v2  }
 0x11c   : > { %457 = vrot.lane.b32.xlu1 %v339_v13, %s1407_s7 }
 0x11d   : > { %1208 = vset.pattern.permute.xlu0 %v1414_v17 }
 0x11e   : > { %790 = vperm.xlu0 %1208, %v1632_v2  }
 0x120   : > { %485 = vrot.lane.b32.xlu1 %v339_v13, %s1408_s14 }
 0x122   : > { %1209 = vset.pattern.permute.xlu0 %v1415_v18  ;;  %v1814_v18 = vrot.slane %v1737_v38, %v1793_v63 }
 0x123   : > { %806 = vperm.xlu0 %1209, %v1632_v2  }
 0x124   : > { %513 = vrot.lane.b32.xlu1 %v339_v13, %s1409_s13 }
 0x127   : > { %1210 = vset.pattern.permute.xlu0 %v1418_v21  ;;  %v335_v21 = vrot.slane %v1713_v23, %v1663_v60 }
 0x128   : > { %541 = vrot.lane.b32.xlu1 %v339_v13, %s1405_s6 }
 0x12c   : > { %600 = vperm.xlu1 %1197, %v242_v11  }
 0x130   : > { %1198 = vset.pattern.permute.xlu1 %v1391_v3 }
 0x131   : > { %624 = vperm.xlu1 %1198, %v242_v11  }
 0x135   : > { %1200 = vset.pattern.permute.xlu1 %v1394_v6 }
 0x136   : > { %676 = vperm.xlu1 %1200, %v242_v11   ;;  %v1799_v11 = vrot.slane %v1737_v38, %v1773_v54 }
 0x13a   : > { %1201 = vset.pattern.permute.xlu1 %v1416_v19  ;;  %v1818_v19 = vrot.slane %v1739_v39, %v1793_v63 }
 0x13b   : > { %684 = vperm.xlu1 %1201, %v1632_v2  }
 0x13f   : > { %1203 = vset.pattern.permute.xlu1 %v1417_v20  ;;  %v1821_v20 = vsub.s32 5, %v1660_v57 }
 0x140   : > { %710 = vperm.xlu1 %1203, %v1632_v2  }
 0x144   : > { %1204 = vset.pattern.permute.xlu1 %v1419_v22 }
 0x145   : > { %726 = vperm.xlu1 %1204, %v1632_v2  }
 0x149   : > { %1212 = vset.pattern.permute.xlu1 %v1389_v0 }
 0x166   : > { %v372_v27 = vpop.permute.xlu1 %371  ;;  %v342_v41 = vpop.permute.xlu0 %341 }
 0x16a   : > { %v400_v29 = vpop.permute.xlu1 %399 }
 0x16e   : > { %v428_v30 = vpop.permute.xlu1 %427 }
 0x172   : > { %v1721_v32 = vpop.permute.xlu1 %455 }
 0x176   : > { %v1725_v34 = vpop.permute.xlu1 %483 }
 0x17a   : > { %v1727_v0 = vpop.permute.xlu1 %511 }
 0x17e   : > { %v344_v40 = vpop.permute.xlu1 %343 }
 0x17f   : > { %v348_v44 = vsel %vm347_vm1, %v342_v41, %v344_v40  ;;  %v349_v45 = vsel %vm347_vm1, %v344_v40, %v342_v41 }
 0x180   : > { %v358_v49 = vmul.f32 %v1744_v42, %v349_v45  ;;  %v359_v50 = vmul.f32 %v1748_v43, %v348_v44 }
 0x182   : > { %v374_v47 = vpop.permute.xlu1 %373  ;;  %v364_v1 = vmul.f32 %v362_v24, %v358_v49  ;;  %v365_v5 = vmul.f32 %v362_v24, %v359_v50  ;;  %v1827_v24 = vsub.s32 6, %v1660_v57  ;;  %v1843_v50 = vrot.slane %v1737_v38, %v1821_v20 }
 0x183   : > { %v376_v55 = vsel %vm375_vm2, %v372_v27, %v374_v47  ;;  %v377_v56 = vsel %vm375_vm2, %v374_v47, %v372_v27 }
 0x184   : > { %v386_v7 = vmul.f32 %v1766_v51, %v377_v56  ;;  %v387_v10 = vmul.f32 %v1770_v52, %v376_v55  ;;  %v368_v22 = vcombine.low %v364_v1, %v365_v5  ;;  %v1853_v55 = vrot.slane %v1737_v38, %v1827_v24 }
 0x185   : > { %v1862_v5 = vsub.s32 7, %v1660_v57 }
 0x186   : > { %v402_v53 = vpop.permute.xlu1 %401  ;;  %v392_v27 = vmul.f32 %v390_v25, %v386_v7 }
 0x187   : > { %v404_v61 = vsel %vm403_vm3, %v400_v29, %v402_v53  ;;  %v405_v62 = vsel %vm403_vm3, %v402_v53, %v400_v29  ;;  %v393_v29 = vmul.f32 %v390_v25, %v387_v10  ;;  %v1847_v53 = vrot.slane %v1739_v39, %v1821_v20 }
 0x188   : > { %v414_v14 = vmul.f32 %v1781_v58, %v405_v62  ;;  %v415_v15 = vmul.f32 %v1785_v59, %v404_v61 }
 0x189   : > { %v396_v56 = vcombine.low %v392_v27, %v393_v29 }
 0x18a   : > { %v430_v13 = vpop.permute.xlu1 %429  ;;  %v420_v44 = vmul.f32 %v1715_v26, %v414_v14  ;;  %v421_v45 = vmul.f32 %v1715_v26, %v415_v15  ;;  %v337_v26 = vmul.f32 %v335_v21, %v1667_v8  ;;  %v558_v14 = vpop.permute.xlu0 %557 }
 0x18b   : > { %v432_v16 = vsel %vm431_vm4, %v428_v30, %v430_v13  ;;  %v433_v17 = vsel %vm431_vm4, %v430_v13, %v428_v30 }
 0x18c   : > { %v442_v30 = vmul.f32 %v1799_v11, %v433_v17  ;;  %v443_v40 = vmul.f32 %v1803_v12, %v432_v16  ;;  %v370_v8 = vadd.f32 %v368_v22, %v337_v26  ;;  %v424_v7 = vcombine.low %v420_v44, %v421_v45 }
 0x18e   : > { %v458_v41 = vpop.permute.xlu1 %457  ;;  %v448_v61 = vmul.f32 %v1717_v28, %v442_v30  ;;  %v449_v62 = vmul.f32 %v1717_v28, %v443_v40  ;;  %v398_v17 = vadd.f32 %v396_v56, %v370_v8  ;;  %v1885_v30 = vrot.slane %v1737_v38, %v1862_v5 }
 0x18f   : > { %v460_v23 = vsel %vm459_vm5, %v1721_v32, %v458_v41  ;;  %v461_v47 = vsel %vm459_vm5, %v458_v41, %v1721_v32  ;;  %v1857_v32 = vrot.slane %v1739_v39, %v1827_v24  ;;  %v1889_v40 = vrot.slane %v1739_v39, %v1862_v5 }
 0x190   : > { %v470_v49 = vmul.f32 %v1814_v18, %v460_v23  ;;  %v471_v25 = vmul.f32 %v1818_v19, %v461_v47  ;;  %v452_v21 = vcombine.low %v448_v61, %v449_v62  ;;  %v426_v41 = vadd.f32 %v424_v7, %v398_v17  ;;  %v540_v23 = vpop.permute.xlu0 %539 }
 0x192   : > { %v486_v1 = vpop.permute.xlu1 %485  ;;  %v476_v15 = vmul.f32 %v1719_v31, %v470_v49  ;;  %v477_v16 = vmul.f32 %v1719_v31, %v471_v25  ;;  %v454_v47 = vadd.f32 %v452_v21, %v426_v41 }
 0x193   : > { %v488_v10 = vsel %vm487_vm6, %v1725_v34, %v486_v1  ;;  %v489_v13 = vsel %vm487_vm6, %v486_v1, %v1725_v34 }
 0x194   : > { %v498_v28 = vmul.f32 %v1843_v50, %v488_v10  ;;  %v499_v57 = vmul.f32 %v1847_v53, %v489_v13  ;;  %v480_v44 = vcombine.low %v476_v15, %v477_v16  ;;  %v569_v13 = vpop.permute.xlu0 %568 }
 0x196   : > { %v504_v22 = vmul.f32 %v1723_v33, %v498_v28  ;;  %v505_v27 = vmul.f32 %v1723_v33, %v499_v57  ;;  %v514_v29 = vpop.permute.xlu1 %513  ;;  %v482_v56 = vadd.f32 %v480_v44, %v454_v47  ;;  %v576_v28 = vrot.slane %v569_v13, %v1663_v60 }
 0x197   : > { %v516_v34 = vsel %vm515_vm7, %v1727_v0, %v514_v29  ;;  %v517_v31 = vsel %vm515_vm7, %v514_v29, %v1727_v0 }
 0x198   : > { %v526_v33 = vmul.f32 %v1853_v55, %v516_v34  ;;  %v527_v45 = vmul.f32 %v1857_v32, %v517_v31  ;;  %v508_v49 = vcombine.low %v504_v22, %v505_v27 }
 0x19a   : > { %v532_v25 = vmul.f32 %v1729_v35, %v526_v33  ;;  %v533_v0 = vmul.f32 %v1729_v35, %v527_v45  ;;  %v542_v26 = vpop.permute.xlu1 %541  ;;  %v510_v8 = vadd.f32 %v508_v49, %v482_v56  ;;  %v651_v45 = vpop.permute.xlu0 %650 }
 0x19b   : > { %v544_v38 = vsel %vm543_vm8, %v540_v23, %v542_v26  ;;  %v545_v39 = vsel %vm543_vm8, %v542_v26, %v540_v23 }
 0x19c   : > { %v536_v61 = vcombine.low %v532_v25, %v533_v0  ;;  %v554_v62 = vmul.f32 %v1885_v30, %v544_v38  ;;  %v555_v1 = vmul.f32 %v1889_v40, %v545_v39 }
 0x19e   : > { %v560_v7 = vmul.f32 %v558_v14, %v554_v62  ;;  %v561_v10 = vmul.f32 %v558_v14, %v555_v1  ;;  %v538_v15 = vadd.f32 %v536_v61, %v510_v8 }
 0x1a0   : > { %v564_v16 = vcombine.low %v560_v7, %v561_v10 }
 0x1a2   : > { %v566_v35 = vadd.f32 %v564_v16, %v538_v15 }
 0x1a4   : > { %v578_v57 = vadd.f32 %v576_v28, %v566_v35 }
 0x1a6   : > { %v634_v17 = vrot.slane %v578_v57, %v1758_v48  ;;  %v638_v21 = vrot.slane %v578_v57, %v1827_v24  ;;  %v583_v27 = vrot.slane %v578_v57, %v1735_v37  ;;  %v587_v29 = vrot.slane %v578_v57, %v1793_v63 }
 0x1a7   : > { %v608_v34 = vrot.slane %v578_v57, %v1755_v46  ;;  %v612_v14 = vrot.slane %v578_v57, %v1821_v20  ;;  %v660_v63 = vrot.slane %v578_v57, %v1773_v54  ;;  %v664_v47 = vrot.slane %v578_v57, %v1862_v5 }
 0x1a8   : > { %v644_v31 = vrot.slane %v634_v17, %v1758_v48  ;;  %v648_v41 = vrot.slane %v638_v21, %v1758_v48  ;;  %v593_v60 = vrot.slane %v583_v27, %v1735_v37  ;;  %v597_v44 = vrot.slane %v587_v29, %v1735_v37  ;;  %v1075_v29 = vld [vmem:[%s2084_s3 + $0x4] sm:$0xf] }
 0x1a9   : > { %v618_v33 = vrot.slane %v608_v34, %v1755_v46  ;;  %v622_v24 = vrot.slane %v612_v14, %v1755_v46  ;;  %v670_v61 = vrot.slane %v660_v63, %v1773_v54  ;;  %v674_v62 = vrot.slane %v664_v47, %v1773_v54 }
 0x1aa   : > { %v653_v26 = vmul.f32 %v651_v45, %v644_v31  ;;  %v654_v38 = vmul.f32 %v651_v45, %v648_v41  ;;  %v1420_v27 = vmov 22  }
 0x1ab   : > { %v601_v22 = vpop.permute.xlu1 %600 }
 0x1ac   : > { %v603_v49 = vmul.f32 %v601_v22, %v593_v60  ;;  %v604_v20 = vmul.f32 %v601_v22, %v597_v44  ;;  %v697_v44 = vpop.permute.xlu0 %696 }
 0x1b0   : > { %v625_v23 = vpop.permute.xlu1 %624 }
 0x1b1   : > { %v627_v25 = vmul.f32 %v625_v23, %v618_v33  ;;  %v628_v0 = vmul.f32 %v625_v23, %v622_v24  ;;  %v743_v24 = vpop.permute.xlu0 %742 }
 0x1b3   : > { %v629_v39 = vadd.f32 %v627_v25, %v603_v49  ;;  %v630_v56 = vadd.f32 %v628_v0, %v604_v20 }
 0x1b5   : > { %v677_v1 = vpop.permute.xlu1 %676  ;;  %v655_v8 = vadd.f32 %v653_v26, %v629_v39  ;;  %v656_v7 = vadd.f32 %v654_v38, %v630_v56  ;;  %v759_v23 = vpop.permute.xlu0 %758 }
 0x1b6   : > { %v679_v10 = vmul.f32 %v677_v1, %v670_v61  ;;  %v680_v13 = vmul.f32 %v677_v1, %v674_v62 }
 0x1b8   : > { %v681_v15 = vadd.f32 %v679_v10, %v655_v8  ;;  %v682_v16 = vadd.f32 %v680_v13, %v656_v7 }
 0x1b9   : > { %v775_v63 = vpop.permute.xlu0 %774 }
 0x1ba   : > { %v685_v5 = vpop.permute.xlu1 %684 }
 0x1bb   : > { %v687_v35 = vadd.f32 %v685_v5, %v681_v15  ;;  %v688_v28 = vadd.f32 %v685_v5, %v682_v16 }
 0x1bd   : > { %vm689_vm9 = vcmp.ge.f32.partialorder %v687_v35, 0.0  ;;  %vm690_vm10 = vcmp.ge.f32.partialorder %v688_v28, 0.0  ;;  %v691_v57 = vmul.f32 0.2, %v687_v35  ;;  %v692_v17 = vmul.f32 0.2, %v688_v28  ;;  %v791_v49 = vpop.permute.xlu0 %790 }
 0x1bf   : > { %v1918_v21 = vsel %vm689_vm9, %v687_v35, %v691_v57  ;;  %v1920_v22 = vsel %vm690_vm10, %v688_v28, %v692_v17  ;;  %v711_v34 = vpop.permute.xlu1 %710 }
 0x1c0   : > { %703 = vrot.lane.b32.xlu1 %v1920_v22, %s1402_s23  ;;  %701 = vrot.lane.b32.xlu0 %v1918_v21, %s1402_s23  ;;  %v699_v17 = vmul.f32 %v697_v44, %v1918_v21 }
 0x1c1   : > { %v807_v25 = vpop.permute.xlu0 %806 }
 0x1c4   : > { %717 = vrot.lane.b32.xlu1 %v1918_v21, %s1401_s21  ;;  %822 = vperm.xlu0 %1210, %v1632_v2   ;;  %v727_v14 = vpop.permute.xlu1 %726 }
 0x1c8   : > { %719 = vrot.lane.b32.xlu1 %v1920_v22, %s1401_s21  ;;  %813 = vrot.lane.b32.xlu0 %v1918_v21, %s1405_s6  ;;  %s973_s21 = sshll.u32 %s238_s9, 4  ;;  %s2039_s21 = int_to_ptr.vmem [resolvable:$true] %s973_s21 }
 0x1c9   : > { %1211 = vset.pattern.permute.xlu0 %v1420_v27  ;;  %v700_v27 = vmul.f32 %v697_v44, %v1920_v22  ;;  %p1321_p8 = scmp.lt.s32.totalorder %s2039_s21, %s1319_s8 }
 0x1cc   : > { %733 = vrot.lane.b32.xlu1 %v1918_v21, %s1403_s27  ;;  %830 = vperm.xlu0 %1211, %v1632_v2  }
 0x1d0   : > { %735 = vrot.lane.b32.xlu1 %v1920_v22, %s1403_s27  ;;  %1214 = vset.pattern.permute.xlu0 %v1392_v4  ;;  %v1421_v4 = vmov 23  }
 0x1d1   : > { %875 = vperm.xlu0 %1214, %v1075_v29  }
 0x1d4   : > { %749 = vrot.lane.b32.xlu1 %v1918_v21, %s1404_s5 }
 0x1d8   : > { %751 = vrot.lane.b32.xlu1 %v1920_v22, %s1404_s5 }
 0x1dc   : > { %765 = vrot.lane.b32.xlu1 %v1918_v21, %s1407_s7 }
 0x1e0   : > { %767 = vrot.lane.b32.xlu1 %v1920_v22, %s1407_s7 }
 0x1e4   : > { %781 = vrot.lane.b32.xlu1 %v1918_v21, %s1408_s14 }
 0x1e8   : > { %783 = vrot.lane.b32.xlu1 %v1920_v22, %s1408_s14 }
 0x1ec   : > { %797 = vrot.lane.b32.xlu1 %v1918_v21, %s1409_s13 }
 0x1f0   : > { %799 = vrot.lane.b32.xlu1 %v1920_v22, %s1409_s13 }
 0x1f4   : > { %845 = vperm.xlu1 %1212, %v1075_v29  }
 0x1f8   : > { %815 = vrot.lane.b32.xlu1 %v1920_v22, %s1405_s6  ;;  %s959_s6 = scalar_lea.sflag [#allocation4], %s1615_s30 }
 0x1f9   : > { %1213 = vset.pattern.permute.xlu1 %v1391_v3 }
 0x1fc   : > { %859 = vperm.xlu1 %1213, %v1075_v29  }
 0x200   : > { %1215 = vset.pattern.permute.xlu1 %v1394_v6 }
 0x201   : > { %891 = vperm.xlu1 %1215, %v1075_v29  }
 0x205   : > { %1216 = vset.pattern.permute.xlu1 %v1421_v4 }
 0x206   : > { %899 = vperm.xlu1 %1216, %v1632_v2  }
 0x20a   : > { %920 = vrot.lane.b32.xlu1 %v1632_v2, %s1422_s26 }
 0x232   : > { %v704_v31 = vpop.permute.xlu1 %703  ;;  %v702_v26 = vpop.permute.xlu0 %701 }
 0x233   : > { %v705_v39 = vsel %vm347_vm1, %v702_v26, %v704_v31  ;;  %v706_v56 = vsel %vm347_vm1, %v704_v31, %v702_v26 }
 0x234   : > { %v707_v61 = vmul.f32 %v706_v56, %v1744_v42  ;;  %v708_v62 = vmul.f32 %v705_v39, %v1748_v43 }
 0x236   : > { %v718_v41 = vpop.permute.xlu1 %717  ;;  %v713_v42 = vmul.f32 %v711_v34, %v707_v61  ;;  %v714_v5 = vmul.f32 %v711_v34, %v708_v62 }
 0x238   : > { %v715_v4 = vadd.f32 %v713_v42, %v699_v17 }
 0x23a   : > { %v720_v60 = vpop.permute.xlu1 %719 }
 0x23b   : > { %v721_v1 = vsel %vm375_vm2, %v718_v41, %v720_v60  ;;  %v722_v8 = vsel %vm375_vm2, %v720_v60, %v718_v41 }
 0x23c   : > { %v723_v15 = vmul.f32 %v722_v8, %v1766_v51  ;;  %v724_v16 = vmul.f32 %v721_v1, %v1770_v52 }
 0x23e   : > { %v734_v33 = vpop.permute.xlu1 %733  ;;  %v729_v29 = vmul.f32 %v727_v14, %v723_v15  ;;  %v730_v51 = vmul.f32 %v727_v14, %v724_v16 }
 0x242   : > { %v736_v3 = vpop.permute.xlu1 %735 }
 0x243   : > { %v737_v7 = vsel %vm403_vm3, %v734_v33, %v736_v3  ;;  %v738_v10 = vsel %vm403_vm3, %v736_v3, %v734_v33  ;;  %v731_v3 = vadd.f32 %v729_v29, %v715_v4 }
 0x244   : > { %v739_v43 = vmul.f32 %v738_v10, %v1781_v58  ;;  %v740_v35 = vmul.f32 %v737_v7, %v1785_v59  ;;  %v716_v59 = vadd.f32 %v714_v5, %v700_v27 }
 0x246   : > { %v750_v45 = vpop.permute.xlu1 %749  ;;  %v745_v60 = vmul.f32 %v743_v24, %v739_v43  ;;  %v746_v33 = vmul.f32 %v743_v24, %v740_v35 }
 0x24a   : > { %v752_v6 = vpop.permute.xlu1 %751 }
 0x24b   : > { %v753_v28 = vsel %vm431_vm4, %v750_v45, %v752_v6  ;;  %v754_v57 = vsel %vm431_vm4, %v752_v6, %v750_v45  ;;  %v732_v45 = vadd.f32 %v730_v51, %v716_v59  ;;  %v823_v6 = vpop.permute.xlu0 %822 }
 0x24c   : > { %v755_v34 = vmul.f32 %v754_v57, %v1799_v11  ;;  %v756_v31 = vmul.f32 %v753_v28, %v1803_v12 }
 0x24e   : > { %v766_v47 = vpop.permute.xlu1 %765  ;;  %v761_v24 = vmul.f32 %v759_v23, %v755_v34 }
 0x24f   : > { %v814_v10 = vpop.permute.xlu0 %813 }
 0x252   : > { %v768_v20 = vpop.permute.xlu1 %767 }
 0x253   : > { %v769_v52 = vsel %vm459_vm5, %v766_v47, %v768_v20  ;;  %v770_v58 = vsel %vm459_vm5, %v768_v20, %v766_v47  ;;  %v762_v47 = vmul.f32 %v759_v23, %v756_v31  ;;  %v831_v57 = vpop.permute.xlu0 %830 }
 0x254   : > { %v771_v14 = vmul.f32 %v769_v52, %v1814_v18  ;;  %v772_v44 = vmul.f32 %v770_v58, %v1818_v19 }
 0x256   : > { %v782_v0 = vpop.permute.xlu1 %781  ;;  %v777_v18 = vmul.f32 %v775_v63, %v771_v14  ;;  %v778_v39 = vmul.f32 %v775_v63, %v772_v44 }
 0x257   : > { %v876_v31 = vpop.permute.xlu0 %875 }
 0x25a   : > { %v784_v38 = vpop.permute.xlu1 %783 }
 0x25b   : > { %v785_v21 = vsel %vm487_vm6, %v782_v0, %v784_v38  ;;  %v786_v22 = vsel %vm487_vm6, %v784_v38, %v782_v0  ;;  %v747_v0 = vadd.f32 %v745_v60, %v731_v3  ;;  %v748_v38 = vadd.f32 %v746_v33, %v732_v45 }
 0x25c   : > { %v787_v20 = vmul.f32 %v785_v21, %v1843_v50  ;;  %v788_v26 = vmul.f32 %v786_v22, %v1847_v53 }
 0x25d   : > { %v763_v62 = vadd.f32 %v761_v24, %v747_v0  ;;  %v764_v1 = vadd.f32 %v762_v47, %v748_v38 }
 0x25e   : > { %v798_v13 = vpop.permute.xlu1 %797  ;;  %v793_v8 = vmul.f32 %v791_v49, %v787_v20  ;;  %v794_v7 = vmul.f32 %v791_v49, %v788_v26 }
 0x25f   : > { %v780_v23 = vadd.f32 %v778_v39, %v764_v1 }
 0x261   : > { %v796_v42 = vadd.f32 %v794_v7, %v780_v23 }
 0x262   : > { %v800_v41 = vpop.permute.xlu1 %799 }
 0x263   : > { %v801_v11 = vsel %vm515_vm7, %v798_v13, %v800_v41  ;;  %v802_v12 = vsel %vm515_vm7, %v800_v41, %v798_v13  ;;  %v779_v13 = vadd.f32 %v777_v18, %v763_v62 }
 0x264   : > { %v803_v19 = vmul.f32 %v801_v11, %v1853_v55  ;;  %v804_v56 = vmul.f32 %v802_v12, %v1857_v32 }
 0x265   : > { %v795_v55 = vadd.f32 %v793_v8, %v779_v13 }
 0x266   : > { %v809_v15 = vmul.f32 %v807_v25, %v803_v19  ;;  %v810_v50 = vmul.f32 %v807_v25, %v804_v56 }
 0x268   : > { %v811_v35 = vadd.f32 %v809_v15, %v795_v55  ;;  %v812_v28 = vadd.f32 %v810_v50, %v796_v42 }
 0x273   : > { %v846_v61 = vpop.permute.xlu1 %845 }
 0x277   : > { %v816_v16 = vpop.permute.xlu1 %815 }
 0x278   : > { %v817_v53 = vsel %vm543_vm8, %v814_v10, %v816_v16  ;;  %v818_v63 = vsel %vm543_vm8, %v816_v16, %v814_v10  ;;  %v1423_v16 = vmov 25  }
 0x279   : > { %v819_v32 = vmul.f32 %v817_v53, %v1885_v30  ;;  %v820_v5 = vmul.f32 %v818_v63, %v1889_v40  ;;  %1217 = vset.pattern.permute.xlu1 %v1423_v16  ;;  %1218 = vset.pattern.permute.xlu0 %v1423_v16 }
 0x27b   : > { %v825_v43 = vmul.f32 %v823_v6, %v819_v32  ;;  %v826_v49 = vmul.f32 %v823_v6, %v820_v5  ;;  %v860_v27 = vpop.permute.xlu1 %859 }
 0x27d   : > { %v827_v17 = vadd.f32 %v825_v43, %v811_v35  ;;  %v828_v25 = vadd.f32 %v826_v49, %v812_v28 }
 0x27f   : > { %v833_v29 = vadd.f32 %v831_v57, %v827_v17  ;;  %v834_v51 = vadd.f32 %v831_v57, %v828_v25 }
 0x280   : > { %v892_v22 = vpop.permute.xlu1 %891 }
 0x281   : > { %v838_v52 = vrot.slane %v833_v29, %v1735_v37  ;;  %v842_v36 = vrot.slane %v834_v51, %v1735_v37  ;;  %v853_v58 = vrot.slane %v833_v29, %v1755_v46  ;;  %v857_v30 = vrot.slane %v834_v51, %v1755_v46 }
 0x282   : > { %v869_v40 = vrot.slane %v833_v29, %v1758_v48  ;;  %v873_v4 = vrot.slane %v834_v51, %v1758_v48  ;;  %v885_v41 = vrot.slane %v833_v29, %v1773_v54  ;;  %v889_v60 = vrot.slane %v834_v51, %v1773_v54 }
 0x283   : > { %v848_v59 = vmul.f32 %v846_v61, %v838_v52  ;;  %v849_v34 = vmul.f32 %v846_v61, %v842_v36  ;;  %v862_v33 = vmul.f32 %v860_v27, %v853_v58  ;;  %v863_v21 = vmul.f32 %v860_v27, %v857_v30 }
 0x284   : > { %v878_v3 = vmul.f32 %v876_v31, %v869_v40  ;;  %v879_v45 = vmul.f32 %v876_v31, %v873_v4  ;;  %v894_v11 = vmul.f32 %v892_v22, %v885_v41  ;;  %v895_v46 = vmul.f32 %v892_v22, %v889_v60 }
 0x285   : > { %v864_v14 = vadd.f32 %v862_v33, %v848_v59  ;;  %v865_v44 = vadd.f32 %v863_v21, %v849_v34  ;;  %v900_v24 = vpop.permute.xlu1 %899 }
 0x287   : > { %v880_v12 = vadd.f32 %v878_v3, %v864_v14  ;;  %v881_v6 = vadd.f32 %v879_v45, %v865_v44 }
 0x289   : > { %v896_v48 = vadd.f32 %v894_v11, %v880_v12  ;;  %v897_v47 = vadd.f32 %v895_v46, %v881_v6  ;;  %v921_v10 = vpop.permute.xlu1 %920 }
 0x28b   : > { %v902_v20 = vadd.f32 %v900_v24, %v896_v48  ;;  %v903_v26 = vadd.f32 %v900_v24, %v897_v47 }
 0x28d   : > { %v904_v0 = vsel %vm249_vm0, %v902_v20, 0.0  ;;  %v905_v54 = vsel %vm249_vm0, %v903_v26, 0.0 }
 0x28e   : > { %v906_v38 = vadd.f32 %v905_v54, %v904_v0 }
 0x290   : > { %907 = vadd.xlane.f32.xlu0 %v906_v38 }
 0x31d   : > { %v908_v18 = vpop.xlane.xlu0 %907 }
 0x31e   : > { %v910_v39 = vmul.f32 0.00390625, %v908_v18 }
 0x320   : > { %v911_v19 = vmul.f32 %v910_v39, %v1632_v2 }
 0x322   : > { %v913_v56 = vsel %vm912_vm11, %v911_v19, 0.0 }
 0x323   : > { %v914_v61 = vrot.slane %v913_v56, 4 }
 0x325   : > { %v915_v62 = vadd.f32 %v914_v61, %v913_v56 }
 0x327   : > { %v916_v1 = vrot.slane %v915_v62, 2 }
 0x329   : > { %v917_v8 = vadd.f32 %v916_v1, %v915_v62 }
 0x32b   : > { %v918_v7 = vrot.slane %v917_v8, 1 }
 0x32d   : > { %v919_v13 = vadd.f32 %v918_v7, %v917_v8 }
 0x32f   : > { %v923_v23 = vadd.f32 %v921_v10, %v919_v13 }
 0x331   : > { %v924_v15 = vmax.f32 %v923_v23, 0.0 }
 0x333   : > { %v928_v50 = vrot.slane %v924_v15, %v1735_v37 }
 0x335   : > { %930 = vrot.lane.b32.xlu1 %v928_v50, %s1404_s5  ;;  %s2037_s5 = scalar_lea.hbm %s2085_s4, %s1082_s25 }
 0x339   : > { %935 = vrot.lane.b32.xlu1 %v1632_v2, %s1407_s7  ;;  %s1314_s7 = scalar_lea.vmem %s2039_s21, 128 }
 0x33a   : > { %p1315_p2 = scmp.ne.s32.totalorder %s2039_s21, %s1314_s7  ;;  %p1322_p12 = scmp.lt.s32.totalorder %s1320_s10, %s1314_s7 }
 0x33c   : > { %p1316_p1 = pnand %p1315_p2, %p1569_p6  ;;  %p1323_p3 = por %p1322_p12, %p1321_p8 }
 0x33e   : > { %p1317_p4 = pneg %p1316_p1 }
 0x340   : > { %p1324_p7 = pnand %p1323_p3, %p1317_p4 }
 0x3a7   : > { %v931_v53 = vpop.permute.xlu1 %930 }
 0x3a8   : > { %v933_v63 = vmul.f32 %v931_v53, %v1632_v2 }
 0x3ab   : > { %v936_v55 = vpop.permute.xlu1 %935 }
 0x3ac   : > { %v938_v42 = vadd.f32 %v936_v55, %v933_v63 }
 0x3ae   : > { %v939_v32 = vsub.f32 0.0, %v938_v42 }
 0x3b0   : > { %v940_v5 = vmul.f32 1.442695, %v939_v32 }
 0x3b2   : > { %1224 = vpow2.f32 %v940_v5 }
 0x3bc   : > { %v1225_v43 = vpop.eup %1224 }
 0x3bd   : > { %v942_v37 = vadd.f32 1.0, %v1225_v43 }
 0x3bf   : > { %1226 = vrcp.f32 %v942_v37 }
 0x3c9   : > { %v1227_v49 = vpop.eup %1226 }
 0x3ca   : > { %947 = vperm.xlu1 %1217, %v1227_v49  }
 0x449   : > { %v948_v35 = vpop.permute.xlu1 %947 }
 0x44a   : > { %v950_v28 = vmul.f32 %v948_v35, %v902_v20  ;;  %v951_v57 = vmul.f32 %v948_v35, %v903_v26 }
 0x44c   : > { %v954_v2 = vcombine.low %v950_v28, %v951_v57 }
 0x44e   : > { %v956_v17 = vadd.f32 %v954_v2, %v1647_v9 }
 0x450   : > { %957 = vst [vmem:[%s238_s9] sm:$0xff] %v956_v17 }
 0x451   : > { %1327 = shalt.err (!%p1324_p7)
}
 0x452   : > { %s1328_s30 = scalar_lea.hbm %s2037_s5, 128  ;;  %s1332_s13 = scalar_lea.hbm %s2085_s4, 256 }
 0x453   : > { %p1329_p10 = scmp.ne.s32.totalorder %s2037_s5, %s1328_s30  ;;  %p1333_p0 = scmp.lt.u32.totalorder %s2037_s5, %s2085_s4 }
 0x454   : > { %p1334_p11 = scmp.lt.u32.totalorder %s1332_s13, %s1328_s30  ;;  %p1336_p2 = scmp.lt.u32.totalorder %s1328_s30, %s2037_s5 }
 0x455   : > { %p1330_p13 = pnand %p1329_p10, %p1569_p6 }
 0x456   : > { %p1335_p9 = por %p1334_p11, %p1333_p0 }
 0x457   : > { %p1331_p5 = pneg %p1330_p13 }
 0x458   : > { %p1337_p1 = por %p1336_p2, %p1335_p9 }
 0x45a   : > { %p1338_p4 = pnand %p1337_p1, %p1331_p5 }
 0x45c   : > { %1341 = shalt.err (!%p1338_p4)
}
 0x45d   : > { %1093 = dma.vmem_to_hbm [thread:$0]  (%p1569_p6), %s2039_s21, 128, %s2037_s5, %s959_s6  }
 0x45e PF: > { %s985_s26 = sand.u32 1, %s1372_s15   ;;  %p2100_p8 = scmp.ne.s32.totalorder %s2090_s22, 0 }
 0x45f   : > { %p2101_p12 = scmp.ge.s32.totalorder %s1384_s18, 2  ;;  %s986_s25 = scalar_lea.sflag [#allocation4], %s985_s26 }
 0x461   : > { %p1107_p3 = pnand %p2101_p12, %p2100_p8 }
 0x463   : > { %1367 = dma.done.wait (!%p1107_p3), %s986_s25, 128  }
 0x464   : > { %1369 = vsyncadd (!%p1107_p3), %s986_s25, 4294967168  ;;  %p18_p7 = scmp.ge.s32.totalorder %s1506_s29, 4   ;;  %s2102_s15 = smov %s1376_s16 }
 0x465   : > { %s2103_s16 = smov %s1380_s17  ;;  %s2104_s17 = smov %s1565_s28 }
 0x466   : > { %s2105_s18 = smov %s1506_s29  ;;  %20 = sbr.rel (!%p18_p7) target bundleno = 6 (0x6), region = 90 }
 0x46d   :  { %991 = vsyncpa [#allocation3], 1 }
 0x46e   :  { %993 = vsyncpa [#allocation3 + $0x1], 1 }
 0x46f   :  { %994 = vsyncpa [#allocation6], 1 }
 0x470   :  { %995 = vsyncpa [#allocation4], 1 }
 0x471   :  { %997 = vsyncpa [#allocation4 + $0x1], 1 }

</bundles_post_ra>
